<compile_context>
chip_gen: v7x
topology: tpu7x:2x2x1
jax: 0.10.0
libtpu: 0.0.40
codegen_flags: <defaults>
</compile_context>

<pallas_src>
import jax
import jax.numpy as jnp
import numpy as np
from jax import lax
from jax.experimental import pallas as pl
from jax.experimental.pallas import tpu as pltpu

# ----------------------------- model sizes ---------------------------------
INPUT_SIZE = 64                       # vocab size
HIDDEN_SIZE = 96
COND_SIZE = 32
HC = HIDDEN_SIZE + COND_SIZE          # 128 = LSTM hidden size (lane-aligned)
HEAD_PAD = 128                        # VAE head width padded to a full lane tile
N_COND = 4
SEQ_LEN = 8


# ------------------------------- kernel ------------------------------------
def encoder_rnn_kernel(
    # inputs (VMEM, whole arrays, no grid)
    gate_ref,      # (T, 4*HC)   pre-gathered rows of emb_in @ W_ih + b_ih + b_hh
    w_hh_ref,      # (HC, 4*HC)  recurrent weights (resident)
    h0_ref,        # (1, HC)     initial hidden  (= cat(hidden, cond_emb))
    c0_ref,        # (1, HC)     initial cell    (= cat(cell,   cond_emb))
    w_proj_ref,    # (HC, 4*HEAD_PAD)  [w_m_h | w_logv_h | w_m_c | w_logv_c] (padded)
    b_proj_ref,    # (1, 4*HEAD_PAD)
    eps_ref,       # (2, HEAD_PAD)  row0 = noise for hidden, row1 = noise for cell
    # outputs (VMEM)
    out_seq_ref,   # (T, HC)     LSTM outputs, one resident (8,128) tile
    stats_ref,     # (2, 2*HEAD_PAD)  row0 = [m_h | logv_h], row1 = [m_c | logv_c]
    z_ref,         # (2, HEAD_PAD)    row0 = z_hidden, row1 = z_cell
):
    T = out_seq_ref.shape[0]
    w_hh = w_hh_ref[...]                          # resident in vregs across the loop

    def step(t, carry):
        h_prev, c_prev = carry                    # (1, HC) each, vreg carries
        # Input-side contribution was pre-folded; only the K=128 recurrent matmul
        # remains on the serial critical path.
        gates = gate_ref[pl.ds(t, 1), :] + jnp.dot(
            h_prev, w_hh, preferred_element_type=jnp.float32)          # (1, 4*HC)

        i_g = jax.nn.sigmoid(gates[:, 0 * HC:1 * HC])
        f_g = jax.nn.sigmoid(gates[:, 1 * HC:2 * HC])
        g_g = jnp.tanh(gates[:, 2 * HC:3 * HC])
        o_g = jax.nn.sigmoid(gates[:, 3 * HC:4 * HC])

        c_new = f_g * c_prev + i_g * g_g
        h_new = o_g * jnp.tanh(c_new)
        out_seq_ref[pl.ds(t, 1), :] = h_new       # one sublane row of the (8,128) tile
        return (h_new, c_new)

    # Fully-unrolled fixed-trip recurrence; h/c stay in vregs.
    h, c = lax.fori_loop(0, T, step, (h0_ref[...], c0_ref[...]), unroll=True)

    # Epilogue: the 4 VAE projection heads fused into one matmul (lane-aligned slices).
    hc = jnp.concatenate([h, c], axis=0)                                 # (2, HC)
    proj = jnp.dot(hc, w_proj_ref[...],
                   preferred_element_type=jnp.float32) + b_proj_ref[...]  # (2, 4*HP)
    # row 0 uses the hidden heads (cols 0:2*HP), row 1 uses the cell heads (2*HP:4*HP)
    stats = jnp.concatenate(
        [proj[0:1, 0:2 * HEAD_PAD],
         proj[1:2, 2 * HEAD_PAD:4 * HEAD_PAD]], axis=0)                  # (2, 2*HP)
    stats_ref[...] = stats
    # z = eps * exp(logvar / 2) + m   (reparameterization)
    z_ref[...] = (eps_ref[...] * jnp.exp(stats[:, HEAD_PAD:] * 0.5)
                  + stats[:, :HEAD_PAD])


# --------------------- one-time parameter preparation ------------------------
def prepare_encoder_params(params):
    """Hoisted out of the per-call wrapper (performance feedback): fold the input
    embedding through W_ih (+ both LSTM biases) and fuse/pad the four VAE heads."""
    gate_tab = (params["emb_in"] @ params["w_ih"]
                + params["b_ih"] + params["b_hh"]).astype(jnp.float32)   # (vocab, 4*HC)

    pad = HEAD_PAD - HIDDEN_SIZE
    pw = lambda w: jnp.pad(w, ((0, 0), (0, pad)))
    pb = lambda b: jnp.pad(b, ((0, 0), (0, pad)))
    w_proj = jnp.concatenate([pw(params["w_m_h"]), pw(params["w_logv_h"]),
                              pw(params["w_m_c"]), pw(params["w_logv_c"])],
                             axis=1).astype(jnp.float32)                 # (HC, 4*HP)
    b_proj = jnp.concatenate([pb(params["b_m_h"]), pb(params["b_logv_h"]),
                              pb(params["b_m_c"]), pb(params["b_logv_c"])],
                             axis=1).astype(jnp.float32)                 # (1, 4*HP)
    prep = dict(params)
    prep["gate_tab"] = gate_tab
    prep["w_proj"] = w_proj
    prep["b_proj"] = b_proj
    return prep


# ------------------------------ wrapper -------------------------------------
def encoder_rnn_forward(prep, tokens, hidden, cell, condition_id, eps):
    """tokens: (T,) int32; hidden/cell: (1,1,HIDDEN); condition_id: () int;
    eps: (2, HIDDEN) standard-normal noise (rows: hidden, cell).

    Returns (output (T,1,HC), z_hidden, z_cell, m_hidden, logvar_hidden, m_cell,
    logvar_cell) with the PyTorch shapes ((1,1,HIDDEN) for the six heads)."""
    T = tokens.shape[0]
    tokens = tokens.astype(jnp.int32)

    # condition embedding lookup + one-time concat into the initial LSTM state
    ce = prep["emb_cond"][condition_id].reshape(1, COND_SIZE).astype(jnp.float32)
    h0 = jnp.concatenate([hidden.reshape(1, HIDDEN_SIZE), ce], -1).astype(jnp.float32)
    c0 = jnp.concatenate([cell.reshape(1, HIDDEN_SIZE), ce], -1).astype(jnp.float32)

    # Pre-gather all T gate rows into one (T, 4*HC) slab (single DMA, no per-step gather)
    gate_rows = prep["gate_tab"][tokens]                                 # (T, 4*HC)

    # Pad the noise to the lane-aligned head width (padding lanes are discarded below).
    eps_pad = jnp.pad(eps.astype(jnp.float32),
                      ((0, 0), (0, HEAD_PAD - HIDDEN_SIZE)))             # (2, HP)

    cost = pl.CostEstimate(
        flops=2 * T * HC * 4 * HC + 2 * 2 * HC * 4 * HEAD_PAD,
        transcendentals=T * 5 * HC + 2 * HEAD_PAD,
        bytes_accessed=(gate_rows.size + prep["w_hh"].size + prep["w_proj"].size
                        + prep["b_proj"].size + 2 * HC + 2 * HEAD_PAD
                        + T * HC + 2 * 2 * HEAD_PAD + 2 * HEAD_PAD) * 4,
    )

    out_seq, stats, z = pl.pallas_call(
        encoder_rnn_kernel,
        out_shape=(
            jax.ShapeDtypeStruct((T, HC), jnp.float32),
            jax.ShapeDtypeStruct((2, 2 * HEAD_PAD), jnp.float32),
            jax.ShapeDtypeStruct((2, HEAD_PAD), jnp.float32),
        ),
        cost_estimate=cost,
    )(gate_rows, prep["w_hh"], h0, c0, prep["w_proj"], prep["b_proj"], eps_pad)

    output = out_seq.reshape(T, 1, HC)
    m_hidden = stats[0, :HIDDEN_SIZE].reshape(1, 1, HIDDEN_SIZE)
    logvar_hidden = stats[0, HEAD_PAD:HEAD_PAD + HIDDEN_SIZE].reshape(1, 1, HIDDEN_SIZE)
    m_cell = stats[1, :HIDDEN_SIZE].reshape(1, 1, HIDDEN_SIZE)
    logvar_cell = stats[1, HEAD_PAD:HEAD_PAD + HIDDEN_SIZE].reshape(1, 1, HIDDEN_SIZE)
    z_hidden = z[0, :HIDDEN_SIZE].reshape(1, 1, HIDDEN_SIZE)
    z_cell = z[1, :HIDDEN_SIZE].reshape(1, 1, HIDDEN_SIZE)
    return output, z_hidden, z_cell, m_hidden, logvar_hidden, m_cell, logvar_cell


# --------------------------- reference (plain JAX) ---------------------------
def encoder_rnn_ref(params, tokens, hidden, cell, condition_id, eps):
    ce = params["emb_cond"][condition_id].reshape(1, COND_SIZE)
    h = jnp.concatenate([hidden.reshape(1, HIDDEN_SIZE), ce], axis=-1)
    c = jnp.concatenate([cell.reshape(1, HIDDEN_SIZE), ce], axis=-1)
    xs = params["emb_in"][tokens]                       # (T, HC)
    outs = []
    for t in range(tokens.shape[0]):
        x = xs[t:t + 1]
        gates = (x @ params["w_ih"] + h @ params["w_hh"]
                 + params["b_ih"] + params["b_hh"])
        i_g = jax.nn.sigmoid(gates[:, 0 * HC:1 * HC])
        f_g = jax.nn.sigmoid(gates[:, 1 * HC:2 * HC])
        g_g = jnp.tanh(gates[:, 2 * HC:3 * HC])
        o_g = jax.nn.sigmoid(gates[:, 3 * HC:4 * HC])
        c = f_g * c + i_g * g_g
        h = o_g * jnp.tanh(c)
        outs.append(h)
    output = jnp.stack(outs, axis=0)                    # (T, 1, HC)
    m_h = h @ params["w_m_h"] + params["b_m_h"]
    logv_h = h @ params["w_logv_h"] + params["b_logv_h"]
    m_c = c @ params["w_m_c"] + params["b_m_c"]
    logv_c = c @ params["w_logv_c"] + params["b_logv_c"]
    z_h = eps[0:1] * jnp.exp(logv_h / 2) + m_h
    z_c = eps[1:2] * jnp.exp(logv_c / 2) + m_c
    return output, z_h, z_c, m_h, logv_h, m_c, logv_c


# ------------------------------- params -------------------------------------
def init_params(key):
    ks = jax.random.split(key, 16)
    s = 0.1
    n = jax.random.normal
    return {
        "emb_in":   s * n(ks[0], (INPUT_SIZE, HC), jnp.float32),
        "emb_cond": s * n(ks[1], (N_COND, COND_SIZE), jnp.float32),
        # LSTM weights pre-transposed to (in, out); gate order i, f, g, o
        "w_ih":     s * n(ks[2], (HC, 4 * HC), jnp.float32),
        "w_hh":     s * n(ks[3], (HC, 4 * HC), jnp.float32),
        "b_ih":     s * n(ks[4], (1, 4 * HC), jnp.float32),
        "b_hh":     s * n(ks[5], (1, 4 * HC), jnp.float32),
        "w_m_h":    s * n(ks[6], (HC, HIDDEN_SIZE), jnp.float32),
        "b_m_h":    s * n(ks[7], (1, HIDDEN_SIZE), jnp.float32),
        "w_logv_h": s * n(ks[8], (HC, HIDDEN_SIZE), jnp.float32),
        "b_logv_h": s * n(ks[9], (1, HIDDEN_SIZE), jnp.float32),
        "w_m_c":    s * n(ks[10], (HC, HIDDEN_SIZE), jnp.float32),
        "b_m_c":    s * n(ks[11], (1, HIDDEN_SIZE), jnp.float32),
        "w_logv_c": s * n(ks[12], (HC, HIDDEN_SIZE), jnp.float32),
        "b_logv_c": s * n(ks[13], (1, HIDDEN_SIZE), jnp.float32),
    }


if __name__ == "__main__":
    key = jax.random.PRNGKey(0)
    kp, kh, kc, kt, ke = jax.random.split(key, 5)
    params = init_params(kp)
    prep = prepare_encoder_params(params)          # one-time (load-time) precompute

    tokens = jax.random.randint(kt, (SEQ_LEN,), 0, INPUT_SIZE, dtype=jnp.int32)
    condition_id = jnp.int32(2)                    # condition in [0, 4)
    hidden = jax.random.normal(kh, (1, 1, HIDDEN_SIZE), jnp.float32)
    cell = jax.random.normal(kc, (1, 1, HIDDEN_SIZE), jnp.float32)
    # sample_z() noise supplied from the host (torch.normal equivalent), shared with ref
    eps = jax.random.normal(ke, (2, HIDDEN_SIZE), jnp.float32)

    fwd = jax.jit(encoder_rnn_forward)
    outs = jax.block_until_ready(fwd(prep, tokens, hidden, cell, condition_id, eps))
    output, z_h, z_c, m_h, logv_h, m_c, logv_c = outs

    out_r, z_h_r, z_c_r, m_h_r, logv_h_r, m_c_r, logv_c_r = encoder_rnn_ref(
        params, tokens, hidden, cell, condition_id, eps)

    assert output.shape == (SEQ_LEN, 1, HC)
    np.testing.assert_allclose(np.asarray(output), np.asarray(out_r),
                               rtol=1e-4, atol=1e-5)
    for got, want in [(z_h, z_h_r), (z_c, z_c_r), (m_h, m_h_r),
                      (logv_h, logv_h_r), (m_c, m_c_r), (logv_c, logv_c_r)]:
        assert got.shape == (1, 1, HIDDEN_SIZE)
        np.testing.assert_allclose(np.asarray(got).reshape(1, -1), np.asarray(want),
                                   rtol=1e-4, atol=1e-5)

    print("KERNEL_OK")
</pallas_src>

<mosaic_0001>
module attributes {stable_mosaic.version = 11 : i64} {
  func.func @encoder_rnn_kernel(%arg0: memref<8x512xf32, #tpu.memory_space<vmem>>, %arg1: memref<128x512xf32, #tpu.memory_space<vmem>>, %arg2: memref<1x128xf32, #tpu.memory_space<vmem>>, %arg3: memref<1x128xf32, #tpu.memory_space<vmem>>, %arg4: memref<128x512xf32, #tpu.memory_space<vmem>>, %arg5: memref<1x512xf32, #tpu.memory_space<vmem>>, %arg6: memref<2x128xf32, #tpu.memory_space<vmem>>, %arg7: memref<8x128xf32, #tpu.memory_space<vmem>>, %arg8: memref<2x256xf32, #tpu.memory_space<vmem>>, %arg9: memref<2x128xf32, #tpu.memory_space<vmem>>) attributes {dimension_semantics = [], scalar_prefetch = 0 : i64, scratch_operands = 0 : i64, tpu.core_type = #tpu.core_type<tc>} {
    %c0 = arith.constant 0 : index
    %c0_0 = arith.constant 0 : index
    %0 = vector.load %arg1[%c0, %c0_0] : memref<128x512xf32, #tpu.memory_space<vmem>>, vector<128x512xf32>
    %c0_1 = arith.constant 0 : index
    %c0_2 = arith.constant 0 : index
    %1 = vector.load %arg2[%c0_1, %c0_2] : memref<1x128xf32, #tpu.memory_space<vmem>>, vector<1x128xf32>
    %c0_3 = arith.constant 0 : index
    %c0_4 = arith.constant 0 : index
    %2 = vector.load %arg3[%c0_3, %c0_4] : memref<1x128xf32, #tpu.memory_space<vmem>>, vector<1x128xf32>
    %c0_i32 = arith.constant 0 : i32
    %3 = arith.index_cast %c0_i32 : i32 to index
    %c0_5 = arith.constant 0 : index
    %4 = vector.load %arg0[%3, %c0_5] : memref<8x512xf32, #tpu.memory_space<vmem>>, vector<1x512xf32>
    %cst = arith.constant dense<0.000000e+00> : vector<1x512xf32>
    %5 = tpu.matmul %1, %0, %cst {dimension_numbers = #tpu.dot_dimension_numbers<[1], [0], [0], [1], [0, 0, 1, 1], [], []>} : vector<1x128xf32>, vector<128x512xf32>, vector<1x512xf32> -> vector<1x512xf32>
    %6 = arith.addf %4, %5 : vector<1x512xf32>
    %7 = vector.extract_strided_slice %6 {offsets = [0, 0], sizes = [1, 128], strides = [1, 1]} : vector<1x512xf32> to vector<1x128xf32>
    %8 = arith.negf %7 : vector<1x128xf32>
    %9 = math.exp %8 : vector<1x128xf32>
    %cst_6 = arith.constant 1.000000e+00 : f32
    %10 = vector.broadcast %cst_6 : f32 to vector<1x128xf32>
    %11 = arith.addf %10, %9 : vector<1x128xf32>
    %12 = arith.divf %10, %11 : vector<1x128xf32>
    %13 = vector.extract_strided_slice %6 {offsets = [0, 128], sizes = [1, 128], strides = [1, 1]} : vector<1x512xf32> to vector<1x128xf32>
    %14 = arith.negf %13 : vector<1x128xf32>
    %15 = math.exp %14 : vector<1x128xf32>
    %cst_7 = arith.constant 1.000000e+00 : f32
    %16 = vector.broadcast %cst_7 : f32 to vector<1x128xf32>
    %17 = arith.addf %16, %15 : vector<1x128xf32>
    %18 = arith.divf %16, %17 : vector<1x128xf32>
    %19 = vector.extract_strided_slice %6 {offsets = [0, 256], sizes = [1, 128], strides = [1, 1]} : vector<1x512xf32> to vector<1x128xf32>
    %20 = math.tanh %19 : vector<1x128xf32>
    %21 = vector.extract_strided_slice %6 {offsets = [0, 384], sizes = [1, 128], strides = [1, 1]} : vector<1x512xf32> to vector<1x128xf32>
    %22 = arith.negf %21 : vector<1x128xf32>
    %23 = math.exp %22 : vector<1x128xf32>
    %cst_8 = arith.constant 1.000000e+00 : f32
    %24 = vector.broadcast %cst_8 : f32 to vector<1x128xf32>
    %25 = arith.addf %24, %23 : vector<1x128xf32>
    %26 = arith.divf %24, %25 : vector<1x128xf32>
    %27 = arith.mulf %18, %2 : vector<1x128xf32>
    %28 = arith.mulf %12, %20 : vector<1x128xf32>
    %29 = arith.addf %27, %28 : vector<1x128xf32>
    %30 = math.tanh %29 : vector<1x128xf32>
    %31 = arith.mulf %26, %30 : vector<1x128xf32>
    %32 = arith.index_cast %c0_i32 : i32 to index
    %c0_9 = arith.constant 0 : index
    %33 = vector.load %arg7[%32, %c0_9] : memref<8x128xf32, #tpu.memory_space<vmem>>, vector<1x128xf32>
    tpu.vector_store %arg7[%32, %c0_9], %31 {strides = array<i32>} : memref<8x128xf32, #tpu.memory_space<vmem>>, vector<1x128xf32>,
    %c1_i32 = arith.constant 1 : i32
    %34 = arith.index_cast %c1_i32 : i32 to index
    %c0_10 = arith.constant 0 : index
    %35 = vector.load %arg0[%34, %c0_10] : memref<8x512xf32, #tpu.memory_space<vmem>>, vector<1x512xf32>
    %cst_11 = arith.constant dense<0.000000e+00> : vector<1x512xf32>
    %36 = tpu.matmul %31, %0, %cst_11 {dimension_numbers = #tpu.dot_dimension_numbers<[1], [0], [0], [1], [0, 0, 1, 1], [], []>} : vector<1x128xf32>, vector<128x512xf32>, vector<1x512xf32> -> vector<1x512xf32>
    %37 = arith.addf %35, %36 : vector<1x512xf32>
    %38 = vector.extract_strided_slice %37 {offsets = [0, 0], sizes = [1, 128], strides = [1, 1]} : vector<1x512xf32> to vector<1x128xf32>
    %39 = arith.negf %38 : vector<1x128xf32>
    %40 = math.exp %39 : vector<1x128xf32>
    %cst_12 = arith.constant 1.000000e+00 : f32
    %41 = vector.broadcast %cst_12 : f32 to vector<1x128xf32>
    %42 = arith.addf %41, %40 : vector<1x128xf32>
    %43 = arith.divf %41, %42 : vector<1x128xf32>
    %44 = vector.extract_strided_slice %37 {offsets = [0, 128], sizes = [1, 128], strides = [1, 1]} : vector<1x512xf32> to vector<1x128xf32>
    %45 = arith.negf %44 : vector<1x128xf32>
    %46 = math.exp %45 : vector<1x128xf32>
    %cst_13 = arith.constant 1.000000e+00 : f32
    %47 = vector.broadcast %cst_13 : f32 to vector<1x128xf32>
    %48 = arith.addf %47, %46 : vector<1x128xf32>
    %49 = arith.divf %47, %48 : vector<1x128xf32>
    %50 = vector.extract_strided_slice %37 {offsets = [0, 256], sizes = [1, 128], strides = [1, 1]} : vector<1x512xf32> to vector<1x128xf32>
    %51 = math.tanh %50 : vector<1x128xf32>
    %52 = vector.extract_strided_slice %37 {offsets = [0, 384], sizes = [1, 128], strides = [1, 1]} : vector<1x512xf32> to vector<1x128xf32>
    %53 = arith.negf %52 : vector<1x128xf32>
    %54 = math.exp %53 : vector<1x128xf32>
    %cst_14 = arith.constant 1.000000e+00 : f32
    %55 = vector.broadcast %cst_14 : f32 to vector<1x128xf32>
    %56 = arith.addf %55, %54 : vector<1x128xf32>
    %57 = arith.divf %55, %56 : vector<1x128xf32>
    %58 = arith.mulf %49, %29 : vector<1x128xf32>
    %59 = arith.mulf %43, %51 : vector<1x128xf32>
    %60 = arith.addf %58, %59 : vector<1x128xf32>
    %61 = math.tanh %60 : vector<1x128xf32>
    %62 = arith.mulf %57, %61 : vector<1x128xf32>
    %63 = arith.index_cast %c1_i32 : i32 to index
    %c0_15 = arith.constant 0 : index
    %64 = vector.load %arg7[%63, %c0_15] : memref<8x128xf32, #tpu.memory_space<vmem>>, vector<1x128xf32>
    tpu.vector_store %arg7[%63, %c0_15], %62 {strides = array<i32>} : memref<8x128xf32, #tpu.memory_space<vmem>>, vector<1x128xf32>,
    %c2_i32 = arith.constant 2 : i32
    %65 = arith.index_cast %c2_i32 : i32 to index
    %c0_16 = arith.constant 0 : index
    %66 = vector.load %arg0[%65, %c0_16] : memref<8x512xf32, #tpu.memory_space<vmem>>, vector<1x512xf32>
    %cst_17 = arith.constant dense<0.000000e+00> : vector<1x512xf32>
    %67 = tpu.matmul %62, %0, %cst_17 {dimension_numbers = #tpu.dot_dimension_numbers<[1], [0], [0], [1], [0, 0, 1, 1], [], []>} : vector<1x128xf32>, vector<128x512xf32>, vector<1x512xf32> -> vector<1x512xf32>
    %68 = arith.addf %66, %67 : vector<1x512xf32>
    %69 = vector.extract_strided_slice %68 {offsets = [0, 0], sizes = [1, 128], strides = [1, 1]} : vector<1x512xf32> to vector<1x128xf32>
    %70 = arith.negf %69 : vector<1x128xf32>
    %71 = math.exp %70 : vector<1x128xf32>
    %cst_18 = arith.constant 1.000000e+00 : f32
    %72 = vector.broadcast %cst_18 : f32 to vector<1x128xf32>
    %73 = arith.addf %72, %71 : vector<1x128xf32>
    %74 = arith.divf %72, %73 : vector<1x128xf32>
    %75 = vector.extract_strided_slice %68 {offsets = [0, 128], sizes = [1, 128], strides = [1, 1]} : vector<1x512xf32> to vector<1x128xf32>
    %76 = arith.negf %75 : vector<1x128xf32>
    %77 = math.exp %76 : vector<1x128xf32>
    %cst_19 = arith.constant 1.000000e+00 : f32
    %78 = vector.broadcast %cst_19 : f32 to vector<1x128xf32>
    %79 = arith.addf %78, %77 : vector<1x128xf32>
    %80 = arith.divf %78, %79 : vector<1x128xf32>
    %81 = vector.extract_strided_slice %68 {offsets = [0, 256], sizes = [1, 128], strides = [1, 1]} : vector<1x512xf32> to vector<1x128xf32>
    %82 = math.tanh %81 : vector<1x128xf32>
    %83 = vector.extract_strided_slice %68 {offsets = [0, 384], sizes = [1, 128], strides = [1, 1]} : vector<1x512xf32> to vector<1x128xf32>
    %84 = arith.negf %83 : vector<1x128xf32>
    %85 = math.exp %84 : vector<1x128xf32>
    %cst_20 = arith.constant 1.000000e+00 : f32
    %86 = vector.broadcast %cst_20 : f32 to vector<1x128xf32>
    %87 = arith.addf %86, %85 : vector<1x128xf32>
    %88 = arith.divf %86, %87 : vector<1x128xf32>
    %89 = arith.mulf %80, %60 : vector<1x128xf32>
    %90 = arith.mulf %74, %82 : vector<1x128xf32>
    %91 = arith.addf %89, %90 : vector<1x128xf32>
    %92 = math.tanh %91 : vector<1x128xf32>
    %93 = arith.mulf %88, %92 : vector<1x128xf32>
    %94 = arith.index_cast %c2_i32 : i32 to index
    %c0_21 = arith.constant 0 : index
    %95 = vector.load %arg7[%94, %c0_21] : memref<8x128xf32, #tpu.memory_space<vmem>>, vector<1x128xf32>
    tpu.vector_store %arg7[%94, %c0_21], %93 {strides = array<i32>} : memref<8x128xf32, #tpu.memory_space<vmem>>, vector<1x128xf32>,
    %c3_i32 = arith.constant 3 : i32
    %96 = arith.index_cast %c3_i32 : i32 to index
    %c0_22 = arith.constant 0 : index
    %97 = vector.load %arg0[%96, %c0_22] : memref<8x512xf32, #tpu.memory_space<vmem>>, vector<1x512xf32>
    %cst_23 = arith.constant dense<0.000000e+00> : vector<1x512xf32>
    %98 = tpu.matmul %93, %0, %cst_23 {dimension_numbers = #tpu.dot_dimension_numbers<[1], [0], [0], [1], [0, 0, 1, 1], [], []>} : vector<1x128xf32>, vector<128x512xf32>, vector<1x512xf32> -> vector<1x512xf32>
    %99 = arith.addf %97, %98 : vector<1x512xf32>
    %100 = vector.extract_strided_slice %99 {offsets = [0, 0], sizes = [1, 128], strides = [1, 1]} : vector<1x512xf32> to vector<1x128xf32>
    %101 = arith.negf %100 : vector<1x128xf32>
    %102 = math.exp %101 : vector<1x128xf32>
    %cst_24 = arith.constant 1.000000e+00 : f32
    %103 = vector.broadcast %cst_24 : f32 to vector<1x128xf32>
    %104 = arith.addf %103, %102 : vector<1x128xf32>
    %105 = arith.divf %103, %104 : vector<1x128xf32>
    %106 = vector.extract_strided_slice %99 {offsets = [0, 128], sizes = [1, 128], strides = [1, 1]} : vector<1x512xf32> to vector<1x128xf32>
    %107 = arith.negf %106 : vector<1x128xf32>
    %108 = math.exp %107 : vector<1x128xf32>
    %cst_25 = arith.constant 1.000000e+00 : f32
    %109 = vector.broadcast %cst_25 : f32 to vector<1x128xf32>
    %110 = arith.addf %109, %108 : vector<1x128xf32>
    %111 = arith.divf %109, %110 : vector<1x128xf32>
    %112 = vector.extract_strided_slice %99 {offsets = [0, 256], sizes = [1, 128], strides = [1, 1]} : vector<1x512xf32> to vector<1x128xf32>
    %113 = math.tanh %112 : vector<1x128xf32>
    %114 = vector.extract_strided_slice %99 {offsets = [0, 384], sizes = [1, 128], strides = [1, 1]} : vector<1x512xf32> to vector<1x128xf32>
    %115 = arith.negf %114 : vector<1x128xf32>
    %116 = math.exp %115 : vector<1x128xf32>
    %cst_26 = arith.constant 1.000000e+00 : f32
    %117 = vector.broadcast %cst_26 : f32 to vector<1x128xf32>
    %118 = arith.addf %117, %116 : vector<1x128xf32>
    %119 = arith.divf %117, %118 : vector<1x128xf32>
    %120 = arith.mulf %111, %91 : vector<1x128xf32>
    %121 = arith.mulf %105, %113 : vector<1x128xf32>
    %122 = arith.addf %120, %121 : vector<1x128xf32>
    %123 = math.tanh %122 : vector<1x128xf32>
    %124 = arith.mulf %119, %123 : vector<1x128xf32>
    %125 = arith.index_cast %c3_i32 : i32 to index
    %c0_27 = arith.constant 0 : index
    %126 = vector.load %arg7[%125, %c0_27] : memref<8x128xf32, #tpu.memory_space<vmem>>, vector<1x128xf32>
    tpu.vector_store %arg7[%125, %c0_27], %124 {strides = array<i32>} : memref<8x128xf32, #tpu.memory_space<vmem>>, vector<1x128xf32>,
    %c4_i32 = arith.constant 4 : i32
    %127 = arith.index_cast %c4_i32 : i32 to index
    %c0_28 = arith.constant 0 : index
    %128 = vector.load %arg0[%127, %c0_28] : memref<8x512xf32, #tpu.memory_space<vmem>>, vector<1x512xf32>
    %cst_29 = arith.constant dense<0.000000e+00> : vector<1x512xf32>
    %129 = tpu.matmul %124, %0, %cst_29 {dimension_numbers = #tpu.dot_dimension_numbers<[1], [0], [0], [1], [0, 0, 1, 1], [], []>} : vector<1x128xf32>, vector<128x512xf32>, vector<1x512xf32> -> vector<1x512xf32>
    %130 = arith.addf %128, %129 : vector<1x512xf32>
    %131 = vector.extract_strided_slice %130 {offsets = [0, 0], sizes = [1, 128], strides = [1, 1]} : vector<1x512xf32> to vector<1x128xf32>
    %132 = arith.negf %131 : vector<1x128xf32>
    %133 = math.exp %132 : vector<1x128xf32>
    %cst_30 = arith.constant 1.000000e+00 : f32
    %134 = vector.broadcast %cst_30 : f32 to vector<1x128xf32>
    %135 = arith.addf %134, %133 : vector<1x128xf32>
    %136 = arith.divf %134, %135 : vector<1x128xf32>
    %137 = vector.extract_strided_slice %130 {offsets = [0, 128], sizes = [1, 128], strides = [1, 1]} : vector<1x512xf32> to vector<1x128xf32>
    %138 = arith.negf %137 : vector<1x128xf32>
    %139 = math.exp %138 : vector<1x128xf32>
    %cst_31 = arith.constant 1.000000e+00 : f32
    %140 = vector.broadcast %cst_31 : f32 to vector<1x128xf32>
    %141 = arith.addf %140, %139 : vector<1x128xf32>
    %142 = arith.divf %140, %141 : vector<1x128xf32>
    %143 = vector.extract_strided_slice %130 {offsets = [0, 256], sizes = [1, 128], strides = [1, 1]} : vector<1x512xf32> to vector<1x128xf32>
    %144 = math.tanh %143 : vector<1x128xf32>
    %145 = vector.extract_strided_slice %130 {offsets = [0, 384], sizes = [1, 128], strides = [1, 1]} : vector<1x512xf32> to vector<1x128xf32>
    %146 = arith.negf %145 : vector<1x128xf32>
    %147 = math.exp %146 : vector<1x128xf32>
    %cst_32 = arith.constant 1.000000e+00 : f32
    %148 = vector.broadcast %cst_32 : f32 to vector<1x128xf32>
    %149 = arith.addf %148, %147 : vector<1x128xf32>
    %150 = arith.divf %148, %149 : vector<1x128xf32>
    %151 = arith.mulf %142, %122 : vector<1x128xf32>
    %152 = arith.mulf %136, %144 : vector<1x128xf32>
    %153 = arith.addf %151, %152 : vector<1x128xf32>
    %154 = math.tanh %153 : vector<1x128xf32>
    %155 = arith.mulf %150, %154 : vector<1x128xf32>
    %156 = arith.index_cast %c4_i32 : i32 to index
    %c0_33 = arith.constant 0 : index
    %157 = vector.load %arg7[%156, %c0_33] : memref<8x128xf32, #tpu.memory_space<vmem>>, vector<1x128xf32>
    tpu.vector_store %arg7[%156, %c0_33], %155 {strides = array<i32>} : memref<8x128xf32, #tpu.memory_space<vmem>>, vector<1x128xf32>,
    %c5_i32 = arith.constant 5 : i32
    %158 = arith.index_cast %c5_i32 : i32 to index
    %c0_34 = arith.constant 0 : index
    %159 = vector.load %arg0[%158, %c0_34] : memref<8x512xf32, #tpu.memory_space<vmem>>, vector<1x512xf32>
    %cst_35 = arith.constant dense<0.000000e+00> : vector<1x512xf32>
    %160 = tpu.matmul %155, %0, %cst_35 {dimension_numbers = #tpu.dot_dimension_numbers<[1], [0], [0], [1], [0, 0, 1, 1], [], []>} : vector<1x128xf32>, vector<128x512xf32>, vector<1x512xf32> -> vector<1x512xf32>
    %161 = arith.addf %159, %160 : vector<1x512xf32>
    %162 = vector.extract_strided_slice %161 {offsets = [0, 0], sizes = [1, 128], strides = [1, 1]} : vector<1x512xf32> to vector<1x128xf32>
    %163 = arith.negf %162 : vector<1x128xf32>
    %164 = math.exp %163 : vector<1x128xf32>
    %cst_36 = arith.constant 1.000000e+00 : f32
    %165 = vector.broadcast %cst_36 : f32 to vector<1x128xf32>
    %166 = arith.addf %165, %164 : vector<1x128xf32>
    %167 = arith.divf %165, %166 : vector<1x128xf32>
    %168 = vector.extract_strided_slice %161 {offsets = [0, 128], sizes = [1, 128], strides = [1, 1]} : vector<1x512xf32> to vector<1x128xf32>
    %169 = arith.negf %168 : vector<1x128xf32>
    %170 = math.exp %169 : vector<1x128xf32>
    %cst_37 = arith.constant 1.000000e+00 : f32
    %171 = vector.broadcast %cst_37 : f32 to vector<1x128xf32>
    %172 = arith.addf %171, %170 : vector<1x128xf32>
    %173 = arith.divf %171, %172 : vector<1x128xf32>
    %174 = vector.extract_strided_slice %161 {offsets = [0, 256], sizes = [1, 128], strides = [1, 1]} : vector<1x512xf32> to vector<1x128xf32>
    %175 = math.tanh %174 : vector<1x128xf32>
    %176 = vector.extract_strided_slice %161 {offsets = [0, 384], sizes = [1, 128], strides = [1, 1]} : vector<1x512xf32> to vector<1x128xf32>
    %177 = arith.negf %176 : vector<1x128xf32>
    %178 = math.exp %177 : vector<1x128xf32>
    %cst_38 = arith.constant 1.000000e+00 : f32
    %179 = vector.broadcast %cst_38 : f32 to vector<1x128xf32>
    %180 = arith.addf %179, %178 : vector<1x128xf32>
    %181 = arith.divf %179, %180 : vector<1x128xf32>
    %182 = arith.mulf %173, %153 : vector<1x128xf32>
    %183 = arith.mulf %167, %175 : vector<1x128xf32>
    %184 = arith.addf %182, %183 : vector<1x128xf32>
    %185 = math.tanh %184 : vector<1x128xf32>
    %186 = arith.mulf %181, %185 : vector<1x128xf32>
    %187 = arith.index_cast %c5_i32 : i32 to index
    %c0_39 = arith.constant 0 : index
    %188 = vector.load %arg7[%187, %c0_39] : memref<8x128xf32, #tpu.memory_space<vmem>>, vector<1x128xf32>
    tpu.vector_store %arg7[%187, %c0_39], %186 {strides = array<i32>} : memref<8x128xf32, #tpu.memory_space<vmem>>, vector<1x128xf32>,
    %c6_i32 = arith.constant 6 : i32
    %189 = arith.index_cast %c6_i32 : i32 to index
    %c0_40 = arith.constant 0 : index
    %190 = vector.load %arg0[%189, %c0_40] : memref<8x512xf32, #tpu.memory_space<vmem>>, vector<1x512xf32>
    %cst_41 = arith.constant dense<0.000000e+00> : vector<1x512xf32>
    %191 = tpu.matmul %186, %0, %cst_41 {dimension_numbers = #tpu.dot_dimension_numbers<[1], [0], [0], [1], [0, 0, 1, 1], [], []>} : vector<1x128xf32>, vector<128x512xf32>, vector<1x512xf32> -> vector<1x512xf32>
    %192 = arith.addf %190, %191 : vector<1x512xf32>
    %193 = vector.extract_strided_slice %192 {offsets = [0, 0], sizes = [1, 128], strides = [1, 1]} : vector<1x512xf32> to vector<1x128xf32>
    %194 = arith.negf %193 : vector<1x128xf32>
    %195 = math.exp %194 : vector<1x128xf32>
    %cst_42 = arith.constant 1.000000e+00 : f32
    %196 = vector.broadcast %cst_42 : f32 to vector<1x128xf32>
    %197 = arith.addf %196, %195 : vector<1x128xf32>
    %198 = arith.divf %196, %197 : vector<1x128xf32>
    %199 = vector.extract_strided_slice %192 {offsets = [0, 128], sizes = [1, 128], strides = [1, 1]} : vector<1x512xf32> to vector<1x128xf32>
    %200 = arith.negf %199 : vector<1x128xf32>
    %201 = math.exp %200 : vector<1x128xf32>
    %cst_43 = arith.constant 1.000000e+00 : f32
    %202 = vector.broadcast %cst_43 : f32 to vector<1x128xf32>
    %203 = arith.addf %202, %201 : vector<1x128xf32>
    %204 = arith.divf %202, %203 : vector<1x128xf32>
    %205 = vector.extract_strided_slice %192 {offsets = [0, 256], sizes = [1, 128], strides = [1, 1]} : vector<1x512xf32> to vector<1x128xf32>
    %206 = math.tanh %205 : vector<1x128xf32>
    %207 = vector.extract_strided_slice %192 {offsets = [0, 384], sizes = [1, 128], strides = [1, 1]} : vector<1x512xf32> to vector<1x128xf32>
    %208 = arith.negf %207 : vector<1x128xf32>
    %209 = math.exp %208 : vector<1x128xf32>
    %cst_44 = arith.constant 1.000000e+00 : f32
    %210 = vector.broadcast %cst_44 : f32 to vector<1x128xf32>
    %211 = arith.addf %210, %209 : vector<1x128xf32>
    %212 = arith.divf %210, %211 : vector<1x128xf32>
    %213 = arith.mulf %204, %184 : vector<1x128xf32>
    %214 = arith.mulf %198, %206 : vector<1x128xf32>
    %215 = arith.addf %213, %214 : vector<1x128xf32>
    %216 = math.tanh %215 : vector<1x128xf32>
    %217 = arith.mulf %212, %216 : vector<1x128xf32>
    %218 = arith.index_cast %c6_i32 : i32 to index
    %c0_45 = arith.constant 0 : index
    %219 = vector.load %arg7[%218, %c0_45] : memref<8x128xf32, #tpu.memory_space<vmem>>, vector<1x128xf32>
    tpu.vector_store %arg7[%218, %c0_45], %217 {strides = array<i32>} : memref<8x128xf32, #tpu.memory_space<vmem>>, vector<1x128xf32>,
    %c7_i32 = arith.constant 7 : i32
    %220 = arith.index_cast %c7_i32 : i32 to index
    %c0_46 = arith.constant 0 : index
    %221 = vector.load %arg0[%220, %c0_46] : memref<8x512xf32, #tpu.memory_space<vmem>>, vector<1x512xf32>
    %cst_47 = arith.constant dense<0.000000e+00> : vector<1x512xf32>
    %222 = tpu.matmul %217, %0, %cst_47 {dimension_numbers = #tpu.dot_dimension_numbers<[1], [0], [0], [1], [0, 0, 1, 1], [], []>} : vector<1x128xf32>, vector<128x512xf32>, vector<1x512xf32> -> vector<1x512xf32>
    %223 = arith.addf %221, %222 : vector<1x512xf32>
    %224 = vector.extract_strided_slice %223 {offsets = [0, 0], sizes = [1, 128], strides = [1, 1]} : vector<1x512xf32> to vector<1x128xf32>
    %225 = arith.negf %224 : vector<1x128xf32>
    %226 = math.exp %225 : vector<1x128xf32>
    %cst_48 = arith.constant 1.000000e+00 : f32
    %227 = vector.broadcast %cst_48 : f32 to vector<1x128xf32>
    %228 = arith.addf %227, %226 : vector<1x128xf32>
    %229 = arith.divf %227, %228 : vector<1x128xf32>
    %230 = vector.extract_strided_slice %223 {offsets = [0, 128], sizes = [1, 128], strides = [1, 1]} : vector<1x512xf32> to vector<1x128xf32>
    %231 = arith.negf %230 : vector<1x128xf32>
    %232 = math.exp %231 : vector<1x128xf32>
    %cst_49 = arith.constant 1.000000e+00 : f32
    %233 = vector.broadcast %cst_49 : f32 to vector<1x128xf32>
    %234 = arith.addf %233, %232 : vector<1x128xf32>
    %235 = arith.divf %233, %234 : vector<1x128xf32>
    %236 = vector.extract_strided_slice %223 {offsets = [0, 256], sizes = [1, 128], strides = [1, 1]} : vector<1x512xf32> to vector<1x128xf32>
    %237 = math.tanh %236 : vector<1x128xf32>
    %238 = vector.extract_strided_slice %223 {offsets = [0, 384], sizes = [1, 128], strides = [1, 1]} : vector<1x512xf32> to vector<1x128xf32>
    %239 = arith.negf %238 : vector<1x128xf32>
    %240 = math.exp %239 : vector<1x128xf32>
    %cst_50 = arith.constant 1.000000e+00 : f32
    %241 = vector.broadcast %cst_50 : f32 to vector<1x128xf32>
    %242 = arith.addf %241, %240 : vector<1x128xf32>
    %243 = arith.divf %241, %242 : vector<1x128xf32>
    %244 = arith.mulf %235, %215 : vector<1x128xf32>
    %245 = arith.mulf %229, %237 : vector<1x128xf32>
    %246 = arith.addf %244, %245 : vector<1x128xf32>
    %247 = math.tanh %246 : vector<1x128xf32>
    %248 = arith.mulf %243, %247 : vector<1x128xf32>
    %249 = arith.index_cast %c7_i32 : i32 to index
    %c0_51 = arith.constant 0 : index
    %250 = vector.load %arg7[%249, %c0_51] : memref<8x128xf32, #tpu.memory_space<vmem>>, vector<1x128xf32>
    tpu.vector_store %arg7[%249, %c0_51], %248 {strides = array<i32>} : memref<8x128xf32, #tpu.memory_space<vmem>>, vector<1x128xf32>,
    %c8_i32 = arith.constant 8 : i32
    %251 = tpu.concatenate %248, %246 in 0 : vector<1x128xf32>, vector<1x128xf32> -> vector<2x128xf32>
    %c0_52 = arith.constant 0 : index
    %c0_53 = arith.constant 0 : index
    %252 = vector.load %arg4[%c0_52, %c0_53] : memref<128x512xf32, #tpu.memory_space<vmem>>, vector<128x512xf32>
    %cst_54 = arith.constant dense<0.000000e+00> : vector<2x512xf32>
    %253 = tpu.matmul %251, %252, %cst_54 {dimension_numbers = #tpu.dot_dimension_numbers<[1], [0], [0], [1], [0, 0, 1, 1], [], []>} : vector<2x128xf32>, vector<128x512xf32>, vector<2x512xf32> -> vector<2x512xf32>
    %c0_55 = arith.constant 0 : index
    %c0_56 = arith.constant 0 : index
    %254 = vector.load %arg5[%c0_55, %c0_56] : memref<1x512xf32, #tpu.memory_space<vmem>>, vector<1x512xf32>
    %255 = vector.broadcast %254 : vector<1x512xf32> to vector<2x512xf32>
    %256 = arith.addf %253, %255 : vector<2x512xf32>
    %257 = vector.extract_strided_slice %256 {offsets = [0, 0], sizes = [1, 256], strides = [1, 1]} : vector<2x512xf32> to vector<1x256xf32>
    %258 = vector.extract_strided_slice %256 {offsets = [1, 256], sizes = [1, 256], strides = [1, 1]} : vector<2x512xf32> to vector<1x256xf32>
    %259 = tpu.concatenate %257, %258 in 0 : vector<1x256xf32>, vector<1x256xf32> -> vector<2x256xf32>
    %c0_57 = arith.constant 0 : index
    %c0_58 = arith.constant 0 : index
    %260 = vector.load %arg8[%c0_57, %c0_58] : memref<2x256xf32, #tpu.memory_space<vmem>>, vector<2x256xf32>
    tpu.vector_store %arg8[%c0_57, %c0_58], %259 {strides = array<i32>} : memref<2x256xf32, #tpu.memory_space<vmem>>, vector<2x256xf32>,
    %c0_59 = arith.constant 0 : index
    %c0_60 = arith.constant 0 : index
    %261 = vector.load %arg6[%c0_59, %c0_60] : memref<2x128xf32, #tpu.memory_space<vmem>>, vector<2x128xf32>
    %262 = vector.extract_strided_slice %259 {offsets = [0, 128], sizes = [2, 128], strides = [1, 1]} : vector<2x256xf32> to vector<2x128xf32>
    %cst_61 = arith.constant 5.000000e-01 : f32
    %263 = vector.broadcast %cst_61 : f32 to vector<2x128xf32>
    %264 = arith.mulf %262, %263 : vector<2x128xf32>
    %265 = math.exp %264 : vector<2x128xf32>
    %266 = arith.mulf %261, %265 : vector<2x128xf32>
    %267 = vector.extract_strided_slice %259 {offsets = [0, 0], sizes = [2, 128], strides = [1, 1]} : vector<2x256xf32> to vector<2x128xf32>
    %268 = arith.addf %266, %267 : vector<2x128xf32>
    %c0_62 = arith.constant 0 : index
    %c0_63 = arith.constant 0 : index
    %269 = vector.load %arg9[%c0_62, %c0_63] : memref<2x128xf32, #tpu.memory_space<vmem>>, vector<2x128xf32>
    tpu.vector_store %arg9[%c0_62, %c0_63], %268 {strides = array<i32>} : memref<2x128xf32, #tpu.memory_space<vmem>>, vector<2x128xf32>,
    return
  }
}

</mosaic_0001>

<bundles_post_ra>
// kernel: encoder_rnn_forward.1
= control target key start
LH: loop header
LB: loop body
LE: loop exit
PB: predicated region body
PF: predicated region fallthrough
CT: control target
= control target key end

     0   :  { %15 = vsyncpa [#allocation3], 0  ;;  %s3406_s0 = inlined_call_operand.vmem [shape: f32[8,512], index: 0, kind: input, shape index: {}]   ;;  %s3407_s1 = inlined_call_operand.hbm [shape: f32[128,512], index: 1, kind: input, shape index: {}]   ;;  %s3408_s2 = inlined_call_operand.vmem [shape: f32[1,128], index: 2, kind: input, shape index: {}]   ;;  %s3409_s3 = inlined_call_operand.vmem [shape: f32[1,128], index: 3, kind: input, shape index: {}]   ;;  %s3410_s4 = inlined_call_operand.hbm [shape: f32[128,512], index: 4, kind: input, shape index: {}]   ;;  %s3411_s5 = inlined_call_operand.vmem [shape: f32[1,512], index: 5, kind: input, shape index: {}]   ;;  %s3412_s6 = inlined_call_operand.vmem [shape: f32[2,128], index: 6, kind: input, shape index: {}]   ;;  %s3413_s7 = inlined_call_operand.hbm [shape: f32[8,128], index: 7, kind: output, shape index: {0}]   ;;  %s3414_s8 = inlined_call_operand.vmem [shape: f32[2,256], index: 8, kind: output, shape index: {1}]   ;;  %s3415_s9 = inlined_call_operand.vmem [shape: f32[2,128], index: 9, kind: output, shape index: {2}]  }
   0x1   :  { %16 = vsyncpa [#allocation6], 0 }
   0x2   :  { %17 = vsyncpa [#allocation4], 0  ;;  %s2869_s30 = smov [#allocation2]   ;;  %s2797_s13 = scalar_lea.hbm %s3407_s1, 8192 }
   0x3   :  { %s25_s10 = sshll.u32 %s2869_s30, 4  ;;  %p2798_p0 = scmp.ne.s32.totalorder %s3407_s1, %s2797_s13  ;;  %s26_s10 = int_to_ptr.vmem [resolvable:$true] %s25_s10 }
   0x4   :  { %p2801_p1 = scmp.lt.u32.totalorder %s2797_s13, %s3407_s1 }
   0x6   :  { %p2803_p2 = pnand %p2801_p1, %p2798_p0 }
   0x8   :  { %2806 = shalt.err (!%p2803_p2)
}
   0x9   :  { %s2807_s18 = scalar_lea.vmem %s26_s10, 8192  ;;  %p2812_p4 = scmp.lt.s32.totalorder %s26_s10, %s26_s10 }
   0xa   :  { %p2808_p3 = scmp.ne.s32.totalorder %s26_s10, %s2807_s18  ;;  %p2813_p5 = scmp.lt.s32.totalorder %s2807_s18, %s2807_s18 }
   0xc   :  { %p2814_p6 = por %p2813_p5, %p2812_p4 }
   0xe   :  { %p2815_p7 = pnand %p2814_p6, %p2808_p3 }
  0x10   :  { %2818 = shalt.err (!%p2815_p7)
}
  0x11   :  { %s2870_s19 = smov 512   ;;  %s2871_s20 = smov 32  }
  0x12   :  { %31 = dma.hbm_to_vmem [thread:$0]  %s3407_s1, 8192, %s26_s10, [#allocation3], %s2870_s19, %s2870_s19, %s2871_s20  }
  0x13   :  { %s2872_s23 = smov [#allocation5]   ;;  %s2819_s27 = scalar_lea.hbm %s3410_s4, 8192 }
  0x14   :  { %s41_s24 = sshll.u32 %s2872_s23, 4  ;;  %p2820_p8 = scmp.ne.s32.totalorder %s3410_s4, %s2819_s27  ;;  %s42_s24 = int_to_ptr.vmem [resolvable:$true] %s41_s24 }
  0x15   :  { %p2823_p9 = scmp.lt.u32.totalorder %s2819_s27, %s3410_s4 }
  0x17   :  { %p2825_p10 = pnand %p2823_p9, %p2820_p8 }
  0x19   :  { %2828 = shalt.err (!%p2825_p10)
}
  0x1a   :  { %s2829_s12 = scalar_lea.vmem %s42_s24, 8192  ;;  %p2834_p12 = scmp.lt.s32.totalorder %s42_s24, %s42_s24 }
  0x1b   :  { %p2830_p11 = scmp.ne.s32.totalorder %s42_s24, %s2829_s12  ;;  %p2835_p13 = scmp.lt.s32.totalorder %s2829_s12, %s2829_s12 }
  0x1d   :  { %p2836_p0 = por %p2835_p13, %p2834_p12 }
  0x1f   :  { %p2837_p1 = pnand %p2836_p0, %p2830_p11 }
  0x21   :  { %2840 = shalt.err (!%p2837_p1)
}
  0x22   :  { %47 = dma.hbm_to_vmem [thread:$0]  %s3410_s4, 8192, %s42_s24, [#allocation6], %s2870_s19, %s2870_s19, %s2871_s20  }
  0x23   :  { %2863 = dma.done.wait [#allocation3], 8192  }
  0x24   :  { %2864 = vsyncadd [#allocation3], 4294959104 }
  0x25   :  { %2865 = dma.done.wait [#allocation6], 8192  }
  0x26   :  { %2866 = vsyncadd [#allocation6], 4294959104  ;;  %v2873_v0 = vmov 0.0   ;;  %v59_v1 = vld [vmem:[#allocation2 + $0x8] sm:$0xff]  ;;  %v61_v3 = vld [vmem:[#allocation2 + $0x18] sm:$0xff]  ;;  %vm1777_vm0 = vcmask 1040384  }
  0x27   :  { %189 = vmatprep.mubr.f32.mxu0 %v2873_v0  ;;  %260 = vmatprep.mubr.f32.mxu1 %v2873_v0  ;;  %v63_v2 = vld [vmem:[#allocation2 + $0x28] sm:$0xff]  ;;  %v65_v5 = vld [vmem:[#allocation2 + $0x38] sm:$0xff]  ;;  %v58_v6 = vld [vmem:[#allocation2] sm:$0xff] }
  0x28   :  { %v2952_v4 = vpack.c.bf16 %v63_v2, %v59_v1  ;;  %v62_v7 = vld [vmem:[#allocation2 + $0x20] sm:$0xff]  ;;  %v2954_v8 = vpack.c.bf16 %v65_v5, %v61_v3  ;;  %v60_v10 = vld [vmem:[#allocation2 + $0x10] sm:$0xff]  ;;  %v67_v12 = vld [vmem:[#allocation2 + $0x48] sm:$0xff] }
  0x29   :  { %v2956_v9 = vpack.c.bf16 %v62_v7, %v58_v6  ;;  %v64_v11 = vld [vmem:[#allocation2 + $0x30] sm:$0xff]  ;;  %v71_v14 = vld [vmem:[#allocation2 + $0x68] sm:$0xff]  ;;  %v69_v15 = vld [vmem:[#allocation2 + $0x58] sm:$0xff] }
  0x2a   :  { %2085 = vmatprep.subr.bf16.mxu0 %v2952_v4  ;;  %v2959_v13 = vpack.c.bf16 %v64_v11, %v60_v10  ;;  %v73_v16 = vld [vmem:[#allocation2 + $0x78] sm:$0xff]  ;;  %2117 = vmatprep.subr.bf16.mxu1 %v2954_v8  ;;  %v2963_v17 = vpack.c.bf16 %v71_v14, %v67_v12  ;;  %v66_v19 = vld [vmem:[#allocation2 + $0x40] sm:$0xff]  ;;  %v68_v21 = vld [vmem:[#allocation2 + $0x50] sm:$0xff] }
  0x2b   :  { %2087 = vmatpush1.bf16.msra.mxu0 %v2956_v9  ;;  %v2965_v18 = vpack.c.bf16 %v73_v16, %v69_v15  ;;  %v70_v20 = vld [vmem:[#allocation2 + $0x60] sm:$0xff]  ;;  %v72_v23 = vld [vmem:[#allocation2 + $0x70] sm:$0xff]  ;;  %v75_v24 = vld [vmem:[#allocation2 + $0x88] sm:$0xff] }
  0x2c   :  { %2119 = vmatpush1.bf16.msra.mxu1 %v2959_v13  ;;  %v2968_v22 = vpack.c.bf16 %v70_v20, %v66_v19  ;;  %v79_v25 = vld [vmem:[#allocation2 + $0xa8] sm:$0xff]  ;;  %2089 = vmatprep.subr.bf16.mxu0 %v2963_v17  ;;  %v2972_v26 = vpack.c.bf16 %v72_v23, %v68_v21  ;;  %v77_v28 = vld [vmem:[#allocation2 + $0x98] sm:$0xff]  ;;  %v74_v30 = vld [vmem:[#allocation2 + $0x80] sm:$0xff] }
  0x2d   :  { %2121 = vmatprep.subr.bf16.mxu1 %v2965_v18  ;;  %v2974_v27 = vpack.c.bf16 %v79_v25, %v75_v24  ;;  %v81_v29 = vld [vmem:[#allocation2 + $0xb8] sm:$0xff]  ;;  %v78_v32 = vld [vmem:[#allocation2 + $0xa0] sm:$0xff]  ;;  %v76_v33 = vld [vmem:[#allocation2 + $0x90] sm:$0xff] }
  0x2e   :  { %v2976_v31 = vpack.c.bf16 %v81_v29, %v77_v28  ;;  %v80_v34 = vld [vmem:[#allocation2 + $0xb0] sm:$0xff]  ;;  %v2979_v35 = vpack.c.bf16 %v78_v32, %v74_v30  ;;  %v83_v36 = vld [vmem:[#allocation2 + $0xc8] sm:$0xff]  ;;  %v85_v38 = vld [vmem:[#allocation2 + $0xd8] sm:$0xff] }
  0x2f   :  { %2091 = vmatpush1.bf16.msra.mxu0 %v2968_v22  ;;  %v87_v37 = vld [vmem:[#allocation2 + $0xe8] sm:$0xff]  ;;  %v2983_v39 = vpack.c.bf16 %v80_v34, %v76_v33  ;;  %v89_v41 = vld [vmem:[#allocation2 + $0xf8] sm:$0xff]  ;;  %v82_v42 = vld [vmem:[#allocation2 + $0xc0] sm:$0xff] }
  0x30   :  { %2123 = vmatpush1.bf16.msra.mxu1 %v2972_v26  ;;  %2093 = vmatprep.subr.bf16.mxu0 %v2974_v27  ;;  %v2985_v40 = vpack.c.bf16 %v87_v37, %v83_v36  ;;  %v86_v43 = vld [vmem:[#allocation2 + $0xe0] sm:$0xff]  ;;  %v2988_v44 = vpack.c.bf16 %v89_v41, %v85_v38  ;;  %v84_v45 = vld [vmem:[#allocation2 + $0xd0] sm:$0xff]  ;;  %v91_v47 = vld [vmem:[#allocation2 + $0x108] sm:$0xff] }
  0x31   :  { %2125 = vmatprep.subr.bf16.mxu1 %v2976_v31  ;;  %v88_v46 = vld [vmem:[#allocation2 + $0xf0] sm:$0xff]  ;;  %v95_v48 = vld [vmem:[#allocation2 + $0x128] sm:$0xff]  ;;  %v93_v49 = vld [vmem:[#allocation2 + $0x118] sm:$0xff]  ;;  %v2991_v51 = vpack.c.bf16 %v86_v43, %v82_v42 }
  0x32   :  { %v97_v50 = vld [vmem:[#allocation2 + $0x138] sm:$0xff]  ;;  %v2995_v52 = vpack.c.bf16 %v88_v46, %v84_v45  ;;  %v2997_v53 = vpack.c.bf16 %v95_v48, %v91_v47  ;;  %v90_v54 = vld [vmem:[#allocation2 + $0x100] sm:$0xff]  ;;  %v92_v56 = vld [vmem:[#allocation2 + $0x110] sm:$0xff] }
  0x33   :  { %2095 = vmatpush1.bf16.msra.mxu0 %v2979_v35  ;;  %v94_v55 = vld [vmem:[#allocation2 + $0x120] sm:$0xff]  ;;  %v3000_v57 = vpack.c.bf16 %v97_v50, %v93_v49  ;;  %v96_v58 = vld [vmem:[#allocation2 + $0x130] sm:$0xff]  ;;  %v99_v59 = vld [vmem:[#allocation2 + $0x148] sm:$0xff]  ;;  %v2874_v49 = vmov 1966171168  }
  0x34   :  { %2127 = vmatpush1.bf16.msra.mxu1 %v2983_v39  ;;  %2097 = vmatprep.subr.bf16.mxu0 %v2985_v40  ;;  %v103_v60 = vld [vmem:[#allocation2 + $0x168] sm:$0xff]  ;;  %v101_v61 = vld [vmem:[#allocation2 + $0x158] sm:$0xff]  ;;  %v3003_v63 = vpack.c.bf16 %v94_v55, %v90_v54  ;;  %v3007_v1 = vpack.c.bf16 %v96_v58, %v92_v56  ;;  %v98_v3 = vld [vmem:[#allocation2 + $0x140] sm:$0xff]  ;;  %v274_v50 = vunpack.c.l.s4 %v2874_v49  ;;  %v276_v54 = vlaneseq }
  0x35   :  { %2129 = vmatprep.subr.bf16.mxu1 %v2988_v44  ;;  %v105_v62 = vld [vmem:[#allocation2 + $0x178] sm:$0xff]  ;;  %v3009_v2 = vpack.c.bf16 %v103_v60, %v99_v59  ;;  %v102_v5 = vld [vmem:[#allocation2 + $0x160] sm:$0xff]  ;;  %v100_v6 = vld [vmem:[#allocation2 + $0x150] sm:$0xff] }
  0x36   :  { %v3012_v7 = vpack.c.bf16 %v105_v62, %v101_v61  ;;  %v104_v10 = vld [vmem:[#allocation2 + $0x170] sm:$0xff]  ;;  %v107_v11 = vld [vmem:[#allocation2 + $0x188] sm:$0xff]  ;;  %v109_v14 = vld [vmem:[#allocation2 + $0x198] sm:$0xff]  ;;  %v3015_v16 = vpack.c.bf16 %v102_v5, %v98_v3  ;;  %v275_v55 = vunpack.c.0.s8 %v274_v50  ;;  %v3087_v56 = vshrl.u32 %v276_v54, 7 }
  0x37   :  { %2099 = vmatpush1.bf16.msra.mxu0 %v2991_v51  ;;  %v111_v12 = vld [vmem:[#allocation2 + $0x1a8] sm:$0xff]  ;;  %v113_v15 = vld [vmem:[#allocation2 + $0x1b8] sm:$0xff]  ;;  %v3019_v19 = vpack.c.bf16 %v104_v10, %v100_v6  ;;  %v106_v21 = vld [vmem:[#allocation2 + $0x180] sm:$0xff] }
  0x38   :  { %2131 = vmatpush1.bf16.msra.mxu1 %v2995_v52  ;;  %2101 = vmatprep.subr.bf16.mxu0 %v2997_v53  ;;  %v3021_v20 = vpack.c.bf16 %v111_v12, %v107_v11  ;;  %v110_v23 = vld [vmem:[#allocation2 + $0x1a0] sm:$0xff]  ;;  %v108_v24 = vld [vmem:[#allocation2 + $0x190] sm:$0xff]  ;;  %v3024_v25 = vpack.c.bf16 %v113_v15, %v109_v14  ;;  %v115_v29 = vld [vmem:[#allocation2 + $0x1c8] sm:$0xff]  ;;  %v3090_v59 = vsub.s32 %v275_v55, %v3087_v56 }
  0x39   :  { %2133 = vmatprep.subr.bf16.mxu1 %v3000_v57  ;;  %v112_v28 = vld [vmem:[#allocation2 + $0x1b0] sm:$0xff]  ;;  %v119_v30 = vld [vmem:[#allocation2 + $0x1e8] sm:$0xff]  ;;  %v117_v32 = vld [vmem:[#allocation2 + $0x1d8] sm:$0xff]  ;;  %v3027_v34 = vpack.c.bf16 %v110_v23, %v106_v21 }
  0x3a   :  { %v121_v33 = vld [vmem:[#allocation2 + $0x1f8] sm:$0xff]  ;;  %v3031_v36 = vpack.c.bf16 %v112_v28, %v108_v24  ;;  %v3033_v37 = vpack.c.bf16 %v119_v30, %v115_v29  ;;  %v114_v38 = vld [vmem:[#allocation2 + $0x1c0] sm:$0xff]  ;;  %v116_v43 = vld [vmem:[#allocation2 + $0x1d0] sm:$0xff] }
  0x3b   :  { %2103 = vmatpush1.bf16.msra.mxu0 %v3003_v63  ;;  %v118_v41 = vld [vmem:[#allocation2 + $0x1e0] sm:$0xff]  ;;  %v3036_v42 = vpack.c.bf16 %v121_v33, %v117_v32  ;;  %v120_v45 = vld [vmem:[#allocation2 + $0x1f0] sm:$0xff] }
  0x3c   :  { %2135 = vmatpush1.bf16.msra.mxu1 %v3007_v1  ;;  %2105 = vmatprep.subr.bf16.mxu0 %v3009_v2  ;;  %v3039_v46 = vpack.c.bf16 %v118_v41, %v114_v38  ;;  %v3043_v47 = vpack.c.bf16 %v120_v45, %v116_v43  ;;  %v122_v48 = vld [vmem:[%s3408_s2] sm:$0x1] }
  0x3d   :  { %2137 = vmatprep.subr.bf16.mxu1 %v3012_v7  ;;  %v124_v12 = vld [vmem:[%s3406_s0] ss:$8 sm:$0xf] }
  0x3f   :  { %2107 = vmatpush1.bf16.msra.mxu0 %v3015_v16 }
  0x40   :  { %2139 = vmatpush1.bf16.msra.mxu1 %v3019_v19  ;;  %2109 = vmatprep.subr.bf16.mxu0 %v3021_v20 }
  0x41   :  { %2141 = vmatprep.subr.bf16.mxu1 %v3024_v25 }
  0x43   :  { %2111 = vmatpush1.bf16.msra.mxu0 %v3027_v34 }
  0x44   :  { %2143 = vmatpush1.bf16.msra.mxu1 %v3031_v36  ;;  %2113 = vmatprep.subr.bf16.mxu0 %v3033_v37 }
  0x45   :  { %2145 = vmatprep.subr.bf16.mxu1 %v3036_v42 }
  0x47   :  { %2115 = vmatpush1.bf16.msra.mxu0 %v3039_v46 }
  0x48   :  { %2147 = vmatpush1.bf16.msra.mxu1 %v3043_v47  ;;  %2149 = vmatprep.subr.bf16.mxu0 %v2952_v4 }
  0x49   :  { %2181 = vmatprep.subr.bf16.mxu1 %v2954_v8 }
  0x4a   :  { %190 = vmatmul.mubr.f32.vlgmr.msra.gmra.mrb[0].mxu0 %v122_v48 }
  0x4b   :  { %261 = vmatmul.mubr.f32.vlgmr.msra.gmra.mrb[0].mxu1 %v122_v48  ;;  %2151 = vmatpush1.bf16.msra.mxu0 %v2956_v9  ;;  %v123_v48 = vld [vmem:[%s3409_s3] sm:$0x1] }
  0x4c   :  { %2183 = vmatpush1.bf16.msra.mxu1 %v2959_v13  ;;  %2153 = vmatprep.subr.bf16.mxu0 %v2963_v17 }
  0x4d   :  { %2185 = vmatprep.subr.bf16.mxu1 %v2965_v18  ;;  %395 = vmatprep.mubr.f32.mxu0 %v2873_v0 }
  0x4e   :  { %466 = vmatprep.mubr.f32.mxu1 %v2873_v0 }
  0x4f   :  { %2155 = vmatpush1.bf16.msra.mxu0 %v2968_v22 }
  0x50   :  { %2187 = vmatpush1.bf16.msra.mxu1 %v2972_v26  ;;  %2157 = vmatprep.subr.bf16.mxu0 %v2974_v27 }
  0x51   :  { %2189 = vmatprep.subr.bf16.mxu1 %v2976_v31 }
  0x53   :  { %2159 = vmatpush1.bf16.msra.mxu0 %v2979_v35 }
  0x54   :  { %2191 = vmatpush1.bf16.msra.mxu1 %v2983_v39  ;;  %2161 = vmatprep.subr.bf16.mxu0 %v2985_v40 }
  0x55   :  { %2193 = vmatprep.subr.bf16.mxu1 %v2988_v44 }
  0x57   :  { %2163 = vmatpush1.bf16.msra.mxu0 %v2991_v51 }
  0x58   :  { %2195 = vmatpush1.bf16.msra.mxu1 %v2995_v52  ;;  %2165 = vmatprep.subr.bf16.mxu0 %v2997_v53 }
  0x59   :  { %2197 = vmatprep.subr.bf16.mxu1 %v3000_v57 }
  0x5b   :  { %2167 = vmatpush1.bf16.msra.mxu0 %v3003_v63 }
  0x5c   :  { %2199 = vmatpush1.bf16.msra.mxu1 %v3007_v1  ;;  %2169 = vmatprep.subr.bf16.mxu0 %v3009_v2 }
  0x5d   :  { %2201 = vmatprep.subr.bf16.mxu1 %v3012_v7 }
  0x5f   :  { %2171 = vmatpush1.bf16.msra.mxu0 %v3015_v16 }
  0x60   :  { %2203 = vmatpush1.bf16.msra.mxu1 %v3019_v19  ;;  %2173 = vmatprep.subr.bf16.mxu0 %v3021_v20 }
  0x61   :  { %2205 = vmatprep.subr.bf16.mxu1 %v3024_v25 }
  0x63   :  { %2175 = vmatpush1.bf16.msra.mxu0 %v3027_v34 }
  0x64   :  { %2207 = vmatpush1.bf16.msra.mxu1 %v3031_v36  ;;  %2177 = vmatprep.subr.bf16.mxu0 %v3033_v37 }
  0x65   :  { %2209 = vmatprep.subr.bf16.mxu1 %v3036_v42 }
  0x67   :  { %2179 = vmatpush1.bf16.msra.mxu0 %v3039_v46 }
  0x68   :  { %2211 = vmatpush1.bf16.msra.mxu1 %v3043_v47  ;;  %2213 = vmatprep.subr.bf16.mxu0 %v2952_v4 }
  0x69   :  { %2245 = vmatprep.subr.bf16.mxu1 %v2954_v8 }
 0x11d   :  { %v191_v58 = vpop.f32.mrb[0].mxu0 }
 0x11e   :  { %v262_v60 = vpop.f32.mrb[0].mxu1  ;;  %v193_v61 = vpop.f32.mrb[1].mxu0 }
 0x11f   :  { %v271_v62 = vcombine.low %v191_v58, %v193_v61  ;;  %v264_v3 = vpop.f32.mrb[1].mxu1 }
 0x120   :  { %v272_v5 = vcombine.low %v262_v60, %v264_v3 }
 0x121   :  { %v279_v6 = vrot.slane %v271_v62, %v3090_v59 }
 0x122   :  { %v286_v10 = vrot.slane %v272_v5, %v3090_v59 }
 0x124   :  { %v287_v11 = vcombine.low %v279_v6, %v286_v10 }
 0x126   :  { %v294_v14 = vrot.slane %v287_v11, %v3090_v59 }
 0x128   :  { %v296_v15 = vadd.f32 %v294_v14, %v124_v12 }
 0x12a   :  { %v2052_v21 = vmul.f32 -1.442695, %v296_v15  ;;  %v304_v23 = vrot.slane %v296_v15, 1  ;;  %v315_v28 = vrot.slane %v296_v15, 3  ;;  %v312_v32 = vrot.slane %v296_v15, 2 }
 0x12c   :  { %2667 = vpow2.f32 %v2052_v21  ;;  %v2053_v24 = vmul.f32 -1.442695, %v304_v23  ;;  %v2054_v29 = vmul.f32 -1.442695, %v315_v28 }
 0x12e   :  { %2669 = vpow2.f32 %v2053_v24  ;;  %v2055_v24 = vld [vmem:[%s3406_s0 + $0x1] ss:$8 sm:$0xf] }
 0x12f   :  { %2671 = vpow2.f32 %v2054_v29 }
 0x136   :  { %v2668_v30 = vpop.eup %2667 }
 0x137   :  { %v300_v33 = vadd.f32 1.0, %v2668_v30 }
 0x138   :  { %v2670_v38 = vpop.eup %2669 }
 0x139   :  { %2673 = vrcp.f32 %v300_v33  ;;  %v309_v41 = vadd.f32 1.0, %v2670_v38  ;;  %v2672_v43 = vpop.eup %2671 }
 0x13a   :  { %2675 = vtanh.f32 %v312_v32  ;;  %v320_v54 = vadd.f32 1.0, %v2672_v43 }
 0x13b   :  { %2677 = vrcp.f32 %v309_v41 }
 0x13c   :  { %2679 = vrcp.f32 %v320_v54 }
 0x143   :  { %v2674_v45 = vpop.eup %2673 }
 0x144   :  { %v2676_v49 = vpop.eup %2675 }
 0x145   :  { %v2678_v50 = vpop.eup %2677  ;;  %v324_v58 = vmul.f32 %v2676_v49, %v2674_v45 }
 0x146   :  { %v323_v55 = vmul.f32 %v2678_v50, %v123_v48  ;;  %v2680_v61 = vpop.eup %2679 }
 0x148   :  { %v3101_v60 = vadd.f32 %v324_v58, %v323_v55 }
 0x14a   :  { %2681 = vtanh.f32 %v3101_v60 }
 0x154   :  { %v2682_v62 = vpop.eup %2681 }
 0x155   :  { %v327_v3 = vmul.f32 %v2682_v62, %v2680_v61 }
 0x157   :  { %328 = vst [vmem:[#allocation7] sm:$0x1] %v327_v3  ;;  %396 = vmatmul.mubr.f32.vlgmr.msra.gmra.mrb[2].mxu0 %v327_v3  ;;  %467 = vmatmul.mubr.f32.vlgmr.msra.gmra.mrb[2].mxu1 %v327_v3 }
 0x158   :  { %2215 = vmatpush1.bf16.msra.mxu0 %v2956_v9  ;;  %2247 = vmatpush1.bf16.msra.mxu1 %v2959_v13 }
 0x159   :  { %2217 = vmatprep.subr.bf16.mxu0 %v2963_v17  ;;  %2249 = vmatprep.subr.bf16.mxu1 %v2965_v18 }
 0x15a   :  { %601 = vmatprep.mubr.f32.mxu0 %v2873_v0  ;;  %672 = vmatprep.mubr.f32.mxu1 %v2873_v0 }
 0x15c   :  { %2219 = vmatpush1.bf16.msra.mxu0 %v2968_v22  ;;  %2251 = vmatpush1.bf16.msra.mxu1 %v2972_v26 }
 0x15d   :  { %2221 = vmatprep.subr.bf16.mxu0 %v2974_v27  ;;  %2253 = vmatprep.subr.bf16.mxu1 %v2976_v31 }
 0x160   :  { %2223 = vmatpush1.bf16.msra.mxu0 %v2979_v35  ;;  %2255 = vmatpush1.bf16.msra.mxu1 %v2983_v39 }
 0x161   :  { %2225 = vmatprep.subr.bf16.mxu0 %v2985_v40  ;;  %2257 = vmatprep.subr.bf16.mxu1 %v2988_v44 }
 0x164   :  { %2227 = vmatpush1.bf16.msra.mxu0 %v2991_v51  ;;  %2259 = vmatpush1.bf16.msra.mxu1 %v2995_v52 }
 0x165   :  { %2229 = vmatprep.subr.bf16.mxu0 %v2997_v53  ;;  %2261 = vmatprep.subr.bf16.mxu1 %v3000_v57 }
 0x168   :  { %2231 = vmatpush1.bf16.msra.mxu0 %v3003_v63  ;;  %2263 = vmatpush1.bf16.msra.mxu1 %v3007_v1 }
 0x169   :  { %2233 = vmatprep.subr.bf16.mxu0 %v3009_v2  ;;  %2265 = vmatprep.subr.bf16.mxu1 %v3012_v7 }
 0x16c   :  { %2235 = vmatpush1.bf16.msra.mxu0 %v3015_v16  ;;  %2267 = vmatpush1.bf16.msra.mxu1 %v3019_v19 }
 0x16d   :  { %2237 = vmatprep.subr.bf16.mxu0 %v3021_v20  ;;  %2269 = vmatprep.subr.bf16.mxu1 %v3024_v25 }
 0x170   :  { %2239 = vmatpush1.bf16.msra.mxu0 %v3027_v34  ;;  %2271 = vmatpush1.bf16.msra.mxu1 %v3031_v36 }
 0x171   :  { %2241 = vmatprep.subr.bf16.mxu0 %v3033_v37  ;;  %2273 = vmatprep.subr.bf16.mxu1 %v3036_v42 }
 0x174   :  { %2243 = vmatpush1.bf16.msra.mxu0 %v3039_v46  ;;  %2275 = vmatpush1.bf16.msra.mxu1 %v3043_v47 }
 0x175   :  { %2277 = vmatprep.subr.bf16.mxu0 %v2952_v4  ;;  %2309 = vmatprep.subr.bf16.mxu1 %v2954_v8 }
 0x22a   :  { %v397_v5 = vpop.f32.mrb[2].mxu0  ;;  %v468_v6 = vpop.f32.mrb[2].mxu1 }
 0x22b   :  { %v399_v10 = vpop.f32.mrb[3].mxu0  ;;  %v470_v11 = vpop.f32.mrb[3].mxu1 }
 0x22c   :  { %v477_v12 = vcombine.low %v397_v5, %v399_v10  ;;  %v478_v14 = vcombine.low %v468_v6, %v470_v11 }
 0x22e   :  { %v485_v15 = vrot.slane %v477_v12, %v3090_v59  ;;  %v492_v21 = vrot.slane %v478_v14, %v3090_v59 }
 0x230   :  { %v493_v23 = vcombine.low %v485_v15, %v492_v21 }
 0x232   :  { %v500_v28 = vrot.slane %v493_v23, %v3090_v59 }
 0x234   :  { %v502_v29 = vadd.f32 %v2055_v24, %v500_v28 }
 0x236   :  { %v2056_v30 = vmul.f32 -1.442695, %v502_v29  ;;  %v510_v32 = vrot.slane %v502_v29, 1  ;;  %v521_v38 = vrot.slane %v502_v29, 3  ;;  %v518_v45 = vrot.slane %v502_v29, 2 }
 0x238   :  { %2683 = vpow2.f32 %v2056_v30  ;;  %v2057_v33 = vmul.f32 -1.442695, %v510_v32  ;;  %v2058_v41 = vmul.f32 -1.442695, %v521_v38 }
 0x239   :  { %v2059_v32 = vld [vmem:[%s3406_s0 + $0x2] ss:$8 sm:$0xf] }
 0x23a   :  { %2685 = vpow2.f32 %v2057_v33 }
 0x23b   :  { %2687 = vpow2.f32 %v2058_v41 }
 0x242   :  { %v2684_v43 = vpop.eup %2683 }
 0x243   :  { %v506_v48 = vadd.f32 1.0, %v2684_v43 }
 0x244   :  { %v2686_v49 = vpop.eup %2685 }
 0x245   :  { %2689 = vrcp.f32 %v506_v48  ;;  %v515_v50 = vadd.f32 1.0, %v2686_v49  ;;  %v2688_v54 = vpop.eup %2687 }
 0x246   :  { %2691 = vtanh.f32 %v518_v45  ;;  %v526_v62 = vadd.f32 1.0, %v2688_v54 }
 0x247   :  { %2693 = vrcp.f32 %v515_v50 }
 0x248   :  { %2695 = vrcp.f32 %v526_v62 }
 0x24f   :  { %v2690_v55 = vpop.eup %2689 }
 0x250   :  { %v2692_v58 = vpop.eup %2691 }
 0x251   :  { %v2694_v61 = vpop.eup %2693  ;;  %v530_v5 = vmul.f32 %v2692_v58, %v2690_v55 }
 0x252   :  { %v529_v3 = vmul.f32 %v2694_v61, %v3101_v60  ;;  %v2696_v10 = vpop.eup %2695 }
 0x254   :  { %v3145_v6 = vadd.f32 %v530_v5, %v529_v3 }
 0x256   :  { %2697 = vtanh.f32 %v3145_v6 }
 0x260   :  { %v2698_v11 = vpop.eup %2697 }
 0x261   :  { %v533_v12 = vmul.f32 %v2698_v11, %v2696_v10 }
 0x263   :  { %534 = vst [vmem:[#allocation7 + $0x1] sm:$0x1] %v533_v12  ;;  %602 = vmatmul.mubr.f32.vlgmr.msra.gmra.mrb[4].mxu0 %v533_v12  ;;  %673 = vmatmul.mubr.f32.vlgmr.msra.gmra.mrb[4].mxu1 %v533_v12 }
 0x264   :  { %2279 = vmatpush1.bf16.msra.mxu0 %v2956_v9  ;;  %2311 = vmatpush1.bf16.msra.mxu1 %v2959_v13 }
 0x265   :  { %2281 = vmatprep.subr.bf16.mxu0 %v2963_v17  ;;  %2313 = vmatprep.subr.bf16.mxu1 %v2965_v18 }
 0x266   :  { %807 = vmatprep.mubr.f32.mxu0 %v2873_v0  ;;  %878 = vmatprep.mubr.f32.mxu1 %v2873_v0 }
 0x268   :  { %2283 = vmatpush1.bf16.msra.mxu0 %v2968_v22  ;;  %2315 = vmatpush1.bf16.msra.mxu1 %v2972_v26 }
 0x269   :  { %2285 = vmatprep.subr.bf16.mxu0 %v2974_v27  ;;  %2317 = vmatprep.subr.bf16.mxu1 %v2976_v31 }
 0x26c   :  { %2287 = vmatpush1.bf16.msra.mxu0 %v2979_v35  ;;  %2319 = vmatpush1.bf16.msra.mxu1 %v2983_v39 }
 0x26d   :  { %2289 = vmatprep.subr.bf16.mxu0 %v2985_v40  ;;  %2321 = vmatprep.subr.bf16.mxu1 %v2988_v44 }
 0x270   :  { %2291 = vmatpush1.bf16.msra.mxu0 %v2991_v51  ;;  %2323 = vmatpush1.bf16.msra.mxu1 %v2995_v52 }
 0x271   :  { %2293 = vmatprep.subr.bf16.mxu0 %v2997_v53  ;;  %2325 = vmatprep.subr.bf16.mxu1 %v3000_v57 }
 0x274   :  { %2295 = vmatpush1.bf16.msra.mxu0 %v3003_v63  ;;  %2327 = vmatpush1.bf16.msra.mxu1 %v3007_v1 }
 0x275   :  { %2297 = vmatprep.subr.bf16.mxu0 %v3009_v2  ;;  %2329 = vmatprep.subr.bf16.mxu1 %v3012_v7 }
 0x278   :  { %2299 = vmatpush1.bf16.msra.mxu0 %v3015_v16  ;;  %2331 = vmatpush1.bf16.msra.mxu1 %v3019_v19 }
 0x279   :  { %2301 = vmatprep.subr.bf16.mxu0 %v3021_v20  ;;  %2333 = vmatprep.subr.bf16.mxu1 %v3024_v25 }
 0x27c   :  { %2303 = vmatpush1.bf16.msra.mxu0 %v3027_v34  ;;  %2335 = vmatpush1.bf16.msra.mxu1 %v3031_v36 }
 0x27d   :  { %2305 = vmatprep.subr.bf16.mxu0 %v3033_v37  ;;  %2337 = vmatprep.subr.bf16.mxu1 %v3036_v42 }
 0x280   :  { %2307 = vmatpush1.bf16.msra.mxu0 %v3039_v46  ;;  %2339 = vmatpush1.bf16.msra.mxu1 %v3043_v47 }
 0x281   :  { %2341 = vmatprep.subr.bf16.mxu0 %v2952_v4  ;;  %2373 = vmatprep.subr.bf16.mxu1 %v2954_v8 }
 0x336   :  { %v603_v60 = vpop.f32.mrb[4].mxu0  ;;  %v674_v14 = vpop.f32.mrb[4].mxu1 }
 0x337   :  { %v605_v15 = vpop.f32.mrb[5].mxu0  ;;  %v676_v21 = vpop.f32.mrb[5].mxu1 }
 0x338   :  { %v683_v23 = vcombine.low %v603_v60, %v605_v15  ;;  %v684_v24 = vcombine.low %v674_v14, %v676_v21 }
 0x33a   :  { %v691_v28 = vrot.slane %v683_v23, %v3090_v59  ;;  %v698_v29 = vrot.slane %v684_v24, %v3090_v59 }
 0x33c   :  { %v699_v30 = vcombine.low %v691_v28, %v698_v29 }
 0x33e   :  { %v706_v33 = vrot.slane %v699_v30, %v3090_v59 }
 0x340   :  { %v708_v38 = vadd.f32 %v2059_v32, %v706_v33 }
 0x342   :  { %v2060_v41 = vmul.f32 -1.442695, %v708_v38  ;;  %v716_v43 = vrot.slane %v708_v38, 1  ;;  %v727_v48 = vrot.slane %v708_v38, 3  ;;  %v724_v54 = vrot.slane %v708_v38, 2 }
 0x344   :  { %2699 = vpow2.f32 %v2060_v41  ;;  %v2061_v45 = vmul.f32 -1.442695, %v716_v43  ;;  %v2062_v49 = vmul.f32 -1.442695, %v727_v48 }
 0x345   :  { %v2063_v43 = vld [vmem:[%s3406_s0 + $0x3] ss:$8 sm:$0xf] }
 0x346   :  { %2701 = vpow2.f32 %v2061_v45 }
 0x347   :  { %2703 = vpow2.f32 %v2062_v49 }
 0x34e   :  { %v2700_v50 = vpop.eup %2699 }
 0x34f   :  { %v712_v55 = vadd.f32 1.0, %v2700_v50 }
 0x350   :  { %v2702_v58 = vpop.eup %2701 }
 0x351   :  { %2705 = vrcp.f32 %v712_v55  ;;  %v721_v61 = vadd.f32 1.0, %v2702_v58  ;;  %v2704_v62 = vpop.eup %2703 }
 0x352   :  { %2707 = vtanh.f32 %v724_v54  ;;  %v732_v11 = vadd.f32 1.0, %v2704_v62 }
 0x353   :  { %2709 = vrcp.f32 %v721_v61 }
 0x354   :  { %2711 = vrcp.f32 %v732_v11 }
 0x35b   :  { %v2706_v3 = vpop.eup %2705 }
 0x35c   :  { %v2708_v5 = vpop.eup %2707 }
 0x35d   :  { %v2710_v10 = vpop.eup %2709  ;;  %v736_v60 = vmul.f32 %v2708_v5, %v2706_v3 }
 0x35e   :  { %v735_v12 = vmul.f32 %v2710_v10, %v3145_v6  ;;  %v2712_v15 = vpop.eup %2711 }
 0x360   :  { %v3189_v14 = vadd.f32 %v736_v60, %v735_v12 }
 0x362   :  { %2713 = vtanh.f32 %v3189_v14 }
 0x36c   :  { %v2714_v21 = vpop.eup %2713 }
 0x36d   :  { %v739_v23 = vmul.f32 %v2714_v21, %v2712_v15 }
 0x36f   :  { %740 = vst [vmem:[#allocation7 + $0x2] sm:$0x1] %v739_v23  ;;  %808 = vmatmul.mubr.f32.vlgmr.msra.gmra.mrb[6].mxu0 %v739_v23  ;;  %879 = vmatmul.mubr.f32.vlgmr.msra.gmra.mrb[6].mxu1 %v739_v23 }
 0x370   :  { %2343 = vmatpush1.bf16.msra.mxu0 %v2956_v9  ;;  %2375 = vmatpush1.bf16.msra.mxu1 %v2959_v13 }
 0x371   :  { %2345 = vmatprep.subr.bf16.mxu0 %v2963_v17  ;;  %2377 = vmatprep.subr.bf16.mxu1 %v2965_v18 }
 0x372   :  { %1013 = vmatprep.mubr.f32.mxu0 %v2873_v0  ;;  %1084 = vmatprep.mubr.f32.mxu1 %v2873_v0 }
 0x374   :  { %2347 = vmatpush1.bf16.msra.mxu0 %v2968_v22  ;;  %2379 = vmatpush1.bf16.msra.mxu1 %v2972_v26 }
 0x375   :  { %2349 = vmatprep.subr.bf16.mxu0 %v2974_v27  ;;  %2381 = vmatprep.subr.bf16.mxu1 %v2976_v31 }
 0x378   :  { %2351 = vmatpush1.bf16.msra.mxu0 %v2979_v35  ;;  %2383 = vmatpush1.bf16.msra.mxu1 %v2983_v39 }
 0x379   :  { %2353 = vmatprep.subr.bf16.mxu0 %v2985_v40  ;;  %2385 = vmatprep.subr.bf16.mxu1 %v2988_v44 }
 0x37c   :  { %2355 = vmatpush1.bf16.msra.mxu0 %v2991_v51  ;;  %2387 = vmatpush1.bf16.msra.mxu1 %v2995_v52 }
 0x37d   :  { %2357 = vmatprep.subr.bf16.mxu0 %v2997_v53  ;;  %2389 = vmatprep.subr.bf16.mxu1 %v3000_v57 }
 0x380   :  { %2359 = vmatpush1.bf16.msra.mxu0 %v3003_v63  ;;  %2391 = vmatpush1.bf16.msra.mxu1 %v3007_v1 }
 0x381   :  { %2361 = vmatprep.subr.bf16.mxu0 %v3009_v2  ;;  %2393 = vmatprep.subr.bf16.mxu1 %v3012_v7 }
 0x384   :  { %2363 = vmatpush1.bf16.msra.mxu0 %v3015_v16  ;;  %2395 = vmatpush1.bf16.msra.mxu1 %v3019_v19 }
 0x385   :  { %2365 = vmatprep.subr.bf16.mxu0 %v3021_v20  ;;  %2397 = vmatprep.subr.bf16.mxu1 %v3024_v25 }
 0x388   :  { %2367 = vmatpush1.bf16.msra.mxu0 %v3027_v34  ;;  %2399 = vmatpush1.bf16.msra.mxu1 %v3031_v36 }
 0x389   :  { %2369 = vmatprep.subr.bf16.mxu0 %v3033_v37  ;;  %2401 = vmatprep.subr.bf16.mxu1 %v3036_v42 }
 0x38c   :  { %2371 = vmatpush1.bf16.msra.mxu0 %v3039_v46  ;;  %2403 = vmatpush1.bf16.msra.mxu1 %v3043_v47 }
 0x38d   :  { %2405 = vmatprep.subr.bf16.mxu0 %v2952_v4  ;;  %2437 = vmatprep.subr.bf16.mxu1 %v2954_v8 }
 0x442   :  { %v809_v6 = vpop.f32.mrb[6].mxu0  ;;  %v880_v24 = vpop.f32.mrb[6].mxu1 }
 0x443   :  { %v811_v28 = vpop.f32.mrb[7].mxu0  ;;  %v882_v29 = vpop.f32.mrb[7].mxu1 }
 0x444   :  { %v889_v30 = vcombine.low %v809_v6, %v811_v28  ;;  %v890_v32 = vcombine.low %v880_v24, %v882_v29 }
 0x446   :  { %v897_v33 = vrot.slane %v889_v30, %v3090_v59  ;;  %v904_v38 = vrot.slane %v890_v32, %v3090_v59 }
 0x448   :  { %v905_v41 = vcombine.low %v897_v33, %v904_v38 }
 0x44a   :  { %v912_v45 = vrot.slane %v905_v41, %v3090_v59 }
 0x44c   :  { %v914_v48 = vadd.f32 %v2063_v43, %v912_v45 }
 0x44e   :  { %v2064_v49 = vmul.f32 -1.442695, %v914_v48  ;;  %v922_v50 = vrot.slane %v914_v48, 1  ;;  %v933_v55 = vrot.slane %v914_v48, 3  ;;  %v930_v62 = vrot.slane %v914_v48, 2 }
 0x450   :  { %2715 = vpow2.f32 %v2064_v49  ;;  %v2065_v54 = vmul.f32 -1.442695, %v922_v50  ;;  %v2066_v58 = vmul.f32 -1.442695, %v933_v55 }
 0x451   :  { %v2067_v50 = vld [vmem:[%s3406_s0 + $0x4] ss:$8 sm:$0xf] }
 0x452   :  { %2717 = vpow2.f32 %v2065_v54 }
 0x453   :  { %2719 = vpow2.f32 %v2066_v58 }
 0x45a   :  { %v2716_v61 = vpop.eup %2715 }
 0x45b   :  { %v918_v3 = vadd.f32 1.0, %v2716_v61 }
 0x45c   :  { %v2718_v5 = vpop.eup %2717 }
 0x45d   :  { %2721 = vrcp.f32 %v918_v3  ;;  %v927_v10 = vadd.f32 1.0, %v2718_v5  ;;  %v2720_v11 = vpop.eup %2719 }
 0x45e   :  { %2723 = vtanh.f32 %v930_v62  ;;  %v938_v21 = vadd.f32 1.0, %v2720_v11 }
 0x45f   :  { %2725 = vrcp.f32 %v927_v10 }
 0x460   :  { %2727 = vrcp.f32 %v938_v21 }
 0x467   :  { %v2722_v12 = vpop.eup %2721 }
 0x468   :  { %v2724_v60 = vpop.eup %2723 }
 0x469   :  { %v2726_v15 = vpop.eup %2725  ;;  %v942_v6 = vmul.f32 %v2724_v60, %v2722_v12 }
 0x46a   :  { %v941_v23 = vmul.f32 %v2726_v15, %v3189_v14  ;;  %v2728_v28 = vpop.eup %2727 }
 0x46c   :  { %v3233_v24 = vadd.f32 %v942_v6, %v941_v23 }
 0x46e   :  { %2729 = vtanh.f32 %v3233_v24 }
 0x478   :  { %v2730_v29 = vpop.eup %2729 }
 0x479   :  { %v945_v30 = vmul.f32 %v2730_v29, %v2728_v28 }
 0x47b   :  { %946 = vst [vmem:[#allocation7 + $0x3] sm:$0x1] %v945_v30  ;;  %1014 = vmatmul.mubr.f32.vlgmr.msra.gmra.mrb[8].mxu0 %v945_v30  ;;  %1085 = vmatmul.mubr.f32.vlgmr.msra.gmra.mrb[8].mxu1 %v945_v30 }
 0x47c   :  { %2407 = vmatpush1.bf16.msra.mxu0 %v2956_v9  ;;  %2439 = vmatpush1.bf16.msra.mxu1 %v2959_v13 }
 0x47d   :  { %2409 = vmatprep.subr.bf16.mxu0 %v2963_v17  ;;  %2441 = vmatprep.subr.bf16.mxu1 %v2965_v18 }
 0x47e   :  { %1219 = vmatprep.mubr.f32.mxu0 %v2873_v0  ;;  %1290 = vmatprep.mubr.f32.mxu1 %v2873_v0 }
 0x480   :  { %2411 = vmatpush1.bf16.msra.mxu0 %v2968_v22  ;;  %2443 = vmatpush1.bf16.msra.mxu1 %v2972_v26 }
 0x481   :  { %2413 = vmatprep.subr.bf16.mxu0 %v2974_v27  ;;  %2445 = vmatprep.subr.bf16.mxu1 %v2976_v31 }
 0x484   :  { %2415 = vmatpush1.bf16.msra.mxu0 %v2979_v35  ;;  %2447 = vmatpush1.bf16.msra.mxu1 %v2983_v39 }
 0x485   :  { %2417 = vmatprep.subr.bf16.mxu0 %v2985_v40  ;;  %2449 = vmatprep.subr.bf16.mxu1 %v2988_v44 }
 0x488   :  { %2419 = vmatpush1.bf16.msra.mxu0 %v2991_v51  ;;  %2451 = vmatpush1.bf16.msra.mxu1 %v2995_v52 }
 0x489   :  { %2421 = vmatprep.subr.bf16.mxu0 %v2997_v53  ;;  %2453 = vmatprep.subr.bf16.mxu1 %v3000_v57 }
 0x48c   :  { %2423 = vmatpush1.bf16.msra.mxu0 %v3003_v63  ;;  %2455 = vmatpush1.bf16.msra.mxu1 %v3007_v1 }
 0x48d   :  { %2425 = vmatprep.subr.bf16.mxu0 %v3009_v2  ;;  %2457 = vmatprep.subr.bf16.mxu1 %v3012_v7 }
 0x490   :  { %2427 = vmatpush1.bf16.msra.mxu0 %v3015_v16  ;;  %2459 = vmatpush1.bf16.msra.mxu1 %v3019_v19 }
 0x491   :  { %2429 = vmatprep.subr.bf16.mxu0 %v3021_v20  ;;  %2461 = vmatprep.subr.bf16.mxu1 %v3024_v25 }
 0x494   :  { %2431 = vmatpush1.bf16.msra.mxu0 %v3027_v34  ;;  %2463 = vmatpush1.bf16.msra.mxu1 %v3031_v36 }
 0x495   :  { %2433 = vmatprep.subr.bf16.mxu0 %v3033_v37  ;;  %2465 = vmatprep.subr.bf16.mxu1 %v3036_v42 }
 0x498   :  { %2435 = vmatpush1.bf16.msra.mxu0 %v3039_v46  ;;  %2467 = vmatpush1.bf16.msra.mxu1 %v3043_v47 }
 0x499   :  { %2469 = vmatprep.subr.bf16.mxu0 %v2952_v4  ;;  %2501 = vmatprep.subr.bf16.mxu1 %v2954_v8 }
 0x54e   :  { %v1015_v14 = vpop.f32.mrb[8].mxu0  ;;  %v1086_v32 = vpop.f32.mrb[8].mxu1 }
 0x54f   :  { %v1017_v33 = vpop.f32.mrb[9].mxu0  ;;  %v1088_v38 = vpop.f32.mrb[9].mxu1 }
 0x550   :  { %v1095_v41 = vcombine.low %v1015_v14, %v1017_v33  ;;  %v1096_v43 = vcombine.low %v1086_v32, %v1088_v38 }
 0x552   :  { %v1103_v45 = vrot.slane %v1095_v41, %v3090_v59  ;;  %v1110_v48 = vrot.slane %v1096_v43, %v3090_v59 }
 0x554   :  { %v1111_v49 = vcombine.low %v1103_v45, %v1110_v48 }
 0x556   :  { %v1118_v54 = vrot.slane %v1111_v49, %v3090_v59 }
 0x558   :  { %v1120_v55 = vadd.f32 %v2067_v50, %v1118_v54 }
 0x55a   :  { %v2068_v58 = vmul.f32 -1.442695, %v1120_v55  ;;  %v1128_v61 = vrot.slane %v1120_v55, 1  ;;  %v1139_v3 = vrot.slane %v1120_v55, 3  ;;  %v1136_v11 = vrot.slane %v1120_v55, 2 }
 0x55c   :  { %2731 = vpow2.f32 %v2068_v58  ;;  %v2069_v62 = vmul.f32 -1.442695, %v1128_v61  ;;  %v2070_v5 = vmul.f32 -1.442695, %v1139_v3 }
 0x55d   :  { %v2071_v61 = vld [vmem:[%s3406_s0 + $0x5] ss:$8 sm:$0xf] }
 0x55e   :  { %2733 = vpow2.f32 %v2069_v62 }
 0x55f   :  { %2735 = vpow2.f32 %v2070_v5 }
 0x566   :  { %v2732_v10 = vpop.eup %2731 }
 0x567   :  { %v1124_v12 = vadd.f32 1.0, %v2732_v10 }
 0x568   :  { %v2734_v60 = vpop.eup %2733 }
 0x569   :  { %2737 = vrcp.f32 %v1124_v12  ;;  %v1133_v15 = vadd.f32 1.0, %v2734_v60  ;;  %v2736_v21 = vpop.eup %2735 }
 0x56a   :  { %2739 = vtanh.f32 %v1136_v11  ;;  %v1144_v29 = vadd.f32 1.0, %v2736_v21 }
 0x56b   :  { %2741 = vrcp.f32 %v1133_v15 }
 0x56c   :  { %2743 = vrcp.f32 %v1144_v29 }
 0x573   :  { %v2738_v23 = vpop.eup %2737 }
 0x574   :  { %v2740_v6 = vpop.eup %2739 }
 0x575   :  { %v2742_v28 = vpop.eup %2741  ;;  %v1148_v14 = vmul.f32 %v2740_v6, %v2738_v23 }
 0x576   :  { %v1147_v30 = vmul.f32 %v2742_v28, %v3233_v24  ;;  %v2744_v33 = vpop.eup %2743 }
 0x578   :  { %v3277_v32 = vadd.f32 %v1148_v14, %v1147_v30 }
 0x57a   :  { %2745 = vtanh.f32 %v3277_v32 }
 0x584   :  { %v2746_v38 = vpop.eup %2745 }
 0x585   :  { %v1151_v41 = vmul.f32 %v2746_v38, %v2744_v33 }
 0x587   :  { %1152 = vst [vmem:[#allocation7 + $0x4] sm:$0x1] %v1151_v41  ;;  %1220 = vmatmul.mubr.f32.vlgmr.msra.gmra.mrb[10].mxu0 %v1151_v41  ;;  %1291 = vmatmul.mubr.f32.vlgmr.msra.gmra.mrb[10].mxu1 %v1151_v41 }
 0x588   :  { %2471 = vmatpush1.bf16.msra.mxu0 %v2956_v9  ;;  %2503 = vmatpush1.bf16.msra.mxu1 %v2959_v13 }
 0x589   :  { %2473 = vmatprep.subr.bf16.mxu0 %v2963_v17  ;;  %2505 = vmatprep.subr.bf16.mxu1 %v2965_v18 }
 0x58a   :  { %1425 = vmatprep.mubr.f32.mxu0 %v2873_v0  ;;  %1496 = vmatprep.mubr.f32.mxu1 %v2873_v0 }
 0x58c   :  { %2475 = vmatpush1.bf16.msra.mxu0 %v2968_v22  ;;  %2507 = vmatpush1.bf16.msra.mxu1 %v2972_v26 }
 0x58d   :  { %2477 = vmatprep.subr.bf16.mxu0 %v2974_v27  ;;  %2509 = vmatprep.subr.bf16.mxu1 %v2976_v31 }
 0x590   :  { %2479 = vmatpush1.bf16.msra.mxu0 %v2979_v35  ;;  %2511 = vmatpush1.bf16.msra.mxu1 %v2983_v39 }
 0x591   :  { %2481 = vmatprep.subr.bf16.mxu0 %v2985_v40  ;;  %2513 = vmatprep.subr.bf16.mxu1 %v2988_v44 }
 0x594   :  { %2483 = vmatpush1.bf16.msra.mxu0 %v2991_v51  ;;  %2515 = vmatpush1.bf16.msra.mxu1 %v2995_v52 }
 0x595   :  { %2485 = vmatprep.subr.bf16.mxu0 %v2997_v53  ;;  %2517 = vmatprep.subr.bf16.mxu1 %v3000_v57 }
 0x598   :  { %2487 = vmatpush1.bf16.msra.mxu0 %v3003_v63  ;;  %2519 = vmatpush1.bf16.msra.mxu1 %v3007_v1 }
 0x599   :  { %2489 = vmatprep.subr.bf16.mxu0 %v3009_v2  ;;  %2521 = vmatprep.subr.bf16.mxu1 %v3012_v7 }
 0x59c   :  { %2491 = vmatpush1.bf16.msra.mxu0 %v3015_v16  ;;  %2523 = vmatpush1.bf16.msra.mxu1 %v3019_v19 }
 0x59d   :  { %2493 = vmatprep.subr.bf16.mxu0 %v3021_v20  ;;  %2525 = vmatprep.subr.bf16.mxu1 %v3024_v25 }
 0x5a0   :  { %2495 = vmatpush1.bf16.msra.mxu0 %v3027_v34  ;;  %2527 = vmatpush1.bf16.msra.mxu1 %v3031_v36 }
 0x5a1   :  { %2497 = vmatprep.subr.bf16.mxu0 %v3033_v37  ;;  %2529 = vmatprep.subr.bf16.mxu1 %v3036_v42 }
 0x5a4   :  { %2499 = vmatpush1.bf16.msra.mxu0 %v3039_v46  ;;  %2531 = vmatpush1.bf16.msra.mxu1 %v3043_v47 }
 0x5a5   :  { %2533 = vmatprep.subr.bf16.mxu0 %v2952_v4  ;;  %2565 = vmatprep.subr.bf16.mxu1 %v2954_v8 }
 0x65a   :  { %v1221_v24 = vpop.f32.mrb[10].mxu0  ;;  %v1292_v43 = vpop.f32.mrb[10].mxu1 }
 0x65b   :  { %v1223_v45 = vpop.f32.mrb[11].mxu0  ;;  %v1294_v48 = vpop.f32.mrb[11].mxu1 }
 0x65c   :  { %v1301_v49 = vcombine.low %v1221_v24, %v1223_v45  ;;  %v1302_v50 = vcombine.low %v1292_v43, %v1294_v48 }
 0x65e   :  { %v1309_v54 = vrot.slane %v1301_v49, %v3090_v59  ;;  %v1316_v55 = vrot.slane %v1302_v50, %v3090_v59  ;;  %v1780_v50 = vld [vmem:[#allocation5 + $0x8] sm:$0xff] }
 0x660   :  { %v1317_v58 = vcombine.low %v1309_v54, %v1316_v55  ;;  %v1784_v54 = vld [vmem:[#allocation5 + $0x28] sm:$0xff]  ;;  %v1782_v55 = vld [vmem:[#allocation5 + $0x18] sm:$0xff] }
 0x662   :  { %v1324_v62 = vrot.slane %v1317_v58, %v3090_v59  ;;  %v2596_v58 = vpack.c.bf16 %v1784_v54, %v1780_v50  ;;  %v1826_v50 = vld [vmem:[#allocation5 + $0x178] sm:$0xff] }
 0x664   :  { %v1326_v4 = vadd.f32 %v2071_v61, %v1324_v62  ;;  %v1786_v61 = vld [vmem:[#allocation5 + $0x38] sm:$0xff]  ;;  %v1779_v62 = vld [vmem:[#allocation5] sm:$0xff] }
 0x666   :  { %v2072_v3 = vmul.f32 -1.442695, %v1326_v4  ;;  %v1334_v8 = vrot.slane %v1326_v4, 1  ;;  %v1345_v10 = vrot.slane %v1326_v4, 3  ;;  %v1342_v60 = vrot.slane %v1326_v4, 2  ;;  %v1783_v4 = vld [vmem:[#allocation5 + $0x20] sm:$0xff] }
 0x668   :  { %2747 = vpow2.f32 %v2072_v3  ;;  %v2073_v5 = vmul.f32 -1.442695, %v1334_v8  ;;  %v2074_v11 = vmul.f32 -1.442695, %v1345_v10  ;;  %v2628_v3 = vpack.c.bf16 %v1786_v61, %v1782_v55  ;;  %v1785_v10 = vld [vmem:[#allocation5 + $0x30] sm:$0xff]  ;;  %v1819_v61 = vld [vmem:[#allocation5 + $0x140] sm:$0xff] }
 0x669   :  { %v2598_v8 = vpack.c.bf16 %v1783_v4, %v1779_v62  ;;  %v1823_v62 = vld [vmem:[#allocation5 + $0x160] sm:$0xff]  ;;  %v1821_v4 = vld [vmem:[#allocation5 + $0x150] sm:$0xff] }
 0x66a   :  { %2749 = vpow2.f32 %v2073_v5  ;;  %v1781_v5 = vld [vmem:[#allocation5 + $0x10] sm:$0xff] }
 0x66b   :  { %2751 = vpow2.f32 %v2074_v11  ;;  %v2630_v11 = vpack.c.bf16 %v1785_v10, %v1781_v5  ;;  %v1828_v5 = vld [vmem:[#allocation5 + $0x188] sm:$0xff] }
 0x66c   :  { %v1832_v10 = vld [vmem:[#allocation5 + $0x1a8] sm:$0xff] }
 0x672   :  { %v2748_v12 = vpop.eup %2747 }
 0x673   :  { %v1330_v15 = vadd.f32 1.0, %v2748_v12  ;;  %v1788_v12 = vld [vmem:[#allocation5 + $0x48] sm:$0xff] }
 0x674   :  { %v2750_v21 = vpop.eup %2749 }
 0x675   :  { %2753 = vrcp.f32 %v1330_v15  ;;  %v1339_v23 = vadd.f32 1.0, %v2750_v21  ;;  %v2752_v6 = vpop.eup %2751  ;;  %v1790_v15 = vld [vmem:[#allocation5 + $0x58] sm:$0xff] }
 0x676   :  { %2755 = vtanh.f32 %v1342_v60  ;;  %v1350_v14 = vadd.f32 1.0, %v2752_v6  ;;  %v1792_v60 = vld [vmem:[#allocation5 + $0x68] sm:$0xff]  ;;  %v1794_v21 = vld [vmem:[#allocation5 + $0x78] sm:$0xff]  ;;  %v1791_v6 = vld [vmem:[#allocation5 + $0x60] sm:$0xff] }
 0x677   :  { %2757 = vrcp.f32 %v1339_v23  ;;  %v1787_v23 = vld [vmem:[#allocation5 + $0x40] sm:$0xff] }
 0x678   :  { %2759 = vrcp.f32 %v1350_v14  ;;  %v1793_v14 = vld [vmem:[#allocation5 + $0x70] sm:$0xff] }
 0x67f   :  { %v2754_v28 = vpop.eup %2753 }
 0x680   :  { %v2756_v29 = vpop.eup %2755 }
 0x681   :  { %v2758_v30 = vpop.eup %2757  ;;  %v1354_v38 = vmul.f32 %v2756_v29, %v2754_v28  ;;  %v2632_v28 = vpack.c.bf16 %v1794_v21, %v1790_v15  ;;  %v2602_v29 = vpack.c.bf16 %v1791_v6, %v1787_v23  ;;  %v1827_v21 = vld [vmem:[#allocation5 + $0x180] sm:$0xff]  ;;  %v1829_v6 = vld [vmem:[#allocation5 + $0x190] sm:$0xff] }
 0x682   :  { %v1353_v33 = vmul.f32 %v2758_v30, %v3277_v32  ;;  %v2760_v24 = vpop.eup %2759  ;;  %v1789_v30 = vld [vmem:[#allocation5 + $0x50] sm:$0xff]  ;;  %v1831_v23 = vld [vmem:[#allocation5 + $0x1a0] sm:$0xff] }
 0x684   :  { %v3321_v41 = vadd.f32 %v1354_v38, %v1353_v33  ;;  %v1796_v33 = vld [vmem:[#allocation5 + $0x88] sm:$0xff]  ;;  %v2634_v38 = vpack.c.bf16 %v1793_v14, %v1789_v30 }
 0x685   :  { %v1836_v30 = vld [vmem:[#allocation5 + $0x1c8] sm:$0xff] }
 0x686   :  { %2761 = vtanh.f32 %v3321_v41  ;;  %v1840_v14 = vld [vmem:[#allocation5 + $0x1e8] sm:$0xff] }
 0x690   :  { %v2762_v43 = vpop.eup %2761 }
 0x691   :  { %v1357_v45 = vmul.f32 %v2762_v43, %v2760_v24  ;;  %v1798_v24 = vld [vmem:[#allocation5 + $0x98] sm:$0xff] }
 0x692   :  { %v1802_v43 = vld [vmem:[#allocation5 + $0xb8] sm:$0xff] }
 0x693   :  { %1358 = vst [vmem:[#allocation7 + $0x5] sm:$0x1] %v1357_v45  ;;  %1426 = vmatmul.mubr.f32.vlgmr.msra.gmra.mrb[12].mxu0 %v1357_v45  ;;  %1497 = vmatmul.mubr.f32.vlgmr.msra.gmra.mrb[12].mxu1 %v1357_v45 }
 0x694   :  { %2535 = vmatpush1.bf16.msra.mxu0 %v2956_v9  ;;  %2567 = vmatpush1.bf16.msra.mxu1 %v2959_v13 }
 0x695   :  { %2537 = vmatprep.subr.bf16.mxu0 %v2963_v17  ;;  %2569 = vmatprep.subr.bf16.mxu1 %v2965_v18 }
 0x696   :  { %1631 = vmatprep.mubr.f32.mxu0 %v2873_v0  ;;  %1702 = vmatprep.mubr.f32.mxu1 %v2873_v0 }
 0x698   :  { %2539 = vmatpush1.bf16.msra.mxu0 %v2968_v22  ;;  %2571 = vmatpush1.bf16.msra.mxu1 %v2972_v26 }
 0x699   :  { %2541 = vmatprep.subr.bf16.mxu0 %v2974_v27  ;;  %2573 = vmatprep.subr.bf16.mxu1 %v2976_v31 }
 0x69c   :  { %2543 = vmatpush1.bf16.msra.mxu0 %v2979_v35  ;;  %2575 = vmatpush1.bf16.msra.mxu1 %v2983_v39  ;;  %v2075_v39 = vld [vmem:[%s3406_s0 + $0x6] ss:$8 sm:$0xf] }
 0x69d   :  { %2545 = vmatprep.subr.bf16.mxu0 %v2985_v40  ;;  %2577 = vmatprep.subr.bf16.mxu1 %v2988_v44 }
 0x6a0   :  { %2547 = vmatpush1.bf16.msra.mxu0 %v2991_v51  ;;  %2579 = vmatpush1.bf16.msra.mxu1 %v2995_v52 }
 0x6a1   :  { %2549 = vmatprep.subr.bf16.mxu0 %v2997_v53  ;;  %2581 = vmatprep.subr.bf16.mxu1 %v3000_v57 }
 0x6a4   :  { %2551 = vmatpush1.bf16.msra.mxu0 %v3003_v63  ;;  %2583 = vmatpush1.bf16.msra.mxu1 %v3007_v1 }
 0x6a5   :  { %2553 = vmatprep.subr.bf16.mxu0 %v3009_v2  ;;  %2585 = vmatprep.subr.bf16.mxu1 %v3012_v7 }
 0x6a8   :  { %2555 = vmatpush1.bf16.msra.mxu0 %v3015_v16  ;;  %2587 = vmatpush1.bf16.msra.mxu1 %v3019_v19 }
 0x6a9   :  { %2557 = vmatprep.subr.bf16.mxu0 %v3021_v20  ;;  %2589 = vmatprep.subr.bf16.mxu1 %v3024_v25 }
 0x6ac   :  { %2559 = vmatpush1.bf16.msra.mxu0 %v3027_v34  ;;  %2591 = vmatpush1.bf16.msra.mxu1 %v3031_v36 }
 0x6ad   :  { %2561 = vmatprep.subr.bf16.mxu0 %v3033_v37  ;;  %2593 = vmatprep.subr.bf16.mxu1 %v3036_v42 }
 0x6b0   :  { %2563 = vmatpush1.bf16.msra.mxu0 %v3039_v46  ;;  %2595 = vmatpush1.bf16.msra.mxu1 %v3043_v47 }
 0x6b1   :  { %2597 = vmatprep.subr.bf16.mxu0 %v2596_v58  ;;  %2629 = vmatprep.subr.bf16.mxu1 %v2628_v3 }
 0x766   :  { %v1427_v9 = vpop.f32.mrb[12].mxu0  ;;  %v1498_v13 = vpop.f32.mrb[12].mxu1 }
 0x767   :  { %v1429_v17 = vpop.f32.mrb[13].mxu0  ;;  %v1500_v18 = vpop.f32.mrb[13].mxu1 }
 0x768   :  { %v1507_v22 = vcombine.low %v1427_v9, %v1429_v17  ;;  %v1508_v26 = vcombine.low %v1498_v13, %v1500_v18  ;;  %v2636_v9 = vpack.c.bf16 %v1802_v43, %v1798_v24  ;;  %v1795_v13 = vld [vmem:[#allocation5 + $0x80] sm:$0xff]  ;;  %v1797_v18 = vld [vmem:[#allocation5 + $0x90] sm:$0xff]  ;;  %v2624_v43 = vpack.c.bf16 %v1840_v14, %v1836_v30 }
 0x769   :  { %v1799_v17 = vld [vmem:[#allocation5 + $0xa0] sm:$0xff] }
 0x76a   :  { %v1515_v27 = vrot.slane %v1507_v22, %v3090_v59  ;;  %v1522_v31 = vrot.slane %v1508_v26, %v3090_v59  ;;  %v2606_v22 = vpack.c.bf16 %v1799_v17, %v1795_v13  ;;  %v1801_v26 = vld [vmem:[#allocation5 + $0xb0] sm:$0xff] }
 0x76b   :  { %v1837_v17 = vld [vmem:[#allocation5 + $0x1d0] sm:$0xff] }
 0x76c   :  { %v1523_v35 = vcombine.low %v1515_v27, %v1522_v31  ;;  %v1804_v27 = vld [vmem:[#allocation5 + $0xc8] sm:$0xff] }
 0x76d   :  { %v1808_v31 = vld [vmem:[#allocation5 + $0xe8] sm:$0xff] }
 0x76e   :  { %v1530_v40 = vrot.slane %v1523_v35, %v3090_v59  ;;  %v2638_v35 = vpack.c.bf16 %v1801_v26, %v1797_v18  ;;  %v1841_v18 = vld [vmem:[#allocation5 + $0x1f0] sm:$0xff] }
 0x76f   :  { %v2658_v26 = vpack.c.bf16 %v1841_v18, %v1837_v17 }
 0x770   :  { %v1532_v44 = vadd.f32 %v2075_v39, %v1530_v40  ;;  %v2608_v39 = vpack.c.bf16 %v1808_v31, %v1804_v27  ;;  %v1806_v40 = vld [vmem:[#allocation5 + $0xd8] sm:$0xff] }
 0x772   :  { %v2076_v51 = vmul.f32 -1.442695, %v1532_v44  ;;  %v1540_v52 = vrot.slane %v1532_v44, 1  ;;  %v1551_v57 = vrot.slane %v1532_v44, 3  ;;  %v1548_v2 = vrot.slane %v1532_v44, 2  ;;  %v1810_v44 = vld [vmem:[#allocation5 + $0xf8] sm:$0xff] }
 0x774   :  { %2763 = vpow2.f32 %v2076_v51  ;;  %v2077_v53 = vmul.f32 -1.442695, %v1540_v52  ;;  %v2078_v63 = vmul.f32 -1.442695, %v1551_v57  ;;  %v1803_v51 = vld [vmem:[#allocation5 + $0xc0] sm:$0xff]  ;;  %v2640_v52 = vpack.c.bf16 %v1810_v44, %v1806_v40  ;;  %v1805_v57 = vld [vmem:[#allocation5 + $0xd0] sm:$0xff] }
 0x776   :  { %2765 = vpow2.f32 %v2077_v53  ;;  %v1807_v53 = vld [vmem:[#allocation5 + $0xe0] sm:$0xff] }
 0x777   :  { %2767 = vpow2.f32 %v2078_v63  ;;  %v1809_v63 = vld [vmem:[#allocation5 + $0xf0] sm:$0xff] }
 0x77e   :  { %v2764_v1 = vpop.eup %2763 }
 0x77f   :  { %v1536_v7 = vadd.f32 1.0, %v2764_v1  ;;  %v2610_v1 = vpack.c.bf16 %v1807_v53, %v1803_v51 }
 0x780   :  { %v2766_v16 = vpop.eup %2765 }
 0x781   :  { %2769 = vrcp.f32 %v1536_v7  ;;  %v1545_v19 = vadd.f32 1.0, %v2766_v16  ;;  %v2768_v20 = vpop.eup %2767  ;;  %v1816_v7 = vld [vmem:[#allocation5 + $0x128] sm:$0xff]  ;;  %v1814_v16 = vld [vmem:[#allocation5 + $0x118] sm:$0xff] }
 0x782   :  { %2771 = vtanh.f32 %v1548_v2  ;;  %v1556_v37 = vadd.f32 1.0, %v2768_v20  ;;  %v1812_v2 = vld [vmem:[#allocation5 + $0x108] sm:$0xff] }
 0x783   :  { %2773 = vrcp.f32 %v1545_v19  ;;  %v2642_v19 = vpack.c.bf16 %v1809_v63, %v1805_v57  ;;  %v2612_v20 = vpack.c.bf16 %v1816_v7, %v1812_v2  ;;  %v2079_v57 = vld [vmem:[%s3406_s0 + $0x7] ss:$8 sm:$0xf]  ;;  %s2875_s0 = smov [#allocation7]  }
 0x784   :  { %2775 = vrcp.f32 %v1556_v37  ;;  %s2034_s30 = sshll.u32 %s2875_s0, 4  ;;  %s2035_s30 = int_to_ptr.vmem [resolvable:$true] %s2034_s30 }
 0x785   :  { %s2841_s11 = scalar_lea.vmem %s2035_s30, 128  ;;  %p2846_p3 = scmp.lt.s32.totalorder %s2035_s30, %s2035_s30 }
 0x786   :  { %p2842_p2 = scmp.ne.s32.totalorder %s2035_s30, %s2841_s11  ;;  %p2847_p4 = scmp.lt.s32.totalorder %s2841_s11, %s2841_s11 }
 0x788   :  { %p2848_p5 = por %p2847_p4, %p2846_p3 }
 0x78a   :  { %p2849_p6 = pnand %p2848_p5, %p2842_p2 }
 0x78b   :  { %v2770_v25 = vpop.eup %2769 }
 0x78c   :  { %v2772_v34 = vpop.eup %2771 }
 0x78d   :  { %v2774_v36 = vpop.eup %2773  ;;  %v1560_v46 = vmul.f32 %v2772_v34, %v2770_v25  ;;  %v1818_v25 = vld [vmem:[#allocation5 + $0x138] sm:$0xff]  ;;  %v1811_v34 = vld [vmem:[#allocation5 + $0x100] sm:$0xff] }
 0x78e   :  { %v1559_v42 = vmul.f32 %v2774_v36, %v3321_v41  ;;  %v2776_v32 = vpop.eup %2775  ;;  %v1800_v41 = vld [vmem:[#allocation5 + $0xa8] sm:$0xff]  ;;  %v1815_v36 = vld [vmem:[#allocation5 + $0x120] sm:$0xff]  ;;  %v2644_v37 = vpack.c.bf16 %v1818_v25, %v1814_v16 }
 0x78f   :  { %v2604_v45 = vpack.c.bf16 %v1800_v41, %v1796_v33  ;;  %v2614_v54 = vpack.c.bf16 %v1815_v36, %v1811_v34  ;;  %v1838_v33 = vld [vmem:[#allocation5 + $0x1d8] sm:$0xff]  ;;  %v2622_v41 = vpack.c.bf16 %v1831_v23, %v1827_v21 }
 0x790   :  { %v3363_v47 = vadd.f32 %v1560_v46, %v1559_v42  ;;  %v1813_v42 = vld [vmem:[#allocation5 + $0x110] sm:$0xff] }
 0x791   :  { %v1817_v46 = vld [vmem:[#allocation5 + $0x130] sm:$0xff] }
 0x792   :  { %2777 = vtanh.f32 %v3363_v47  ;;  %v2646_v55 = vpack.c.bf16 %v1817_v46, %v1813_v42 }
 0x79c   :  { %v2778_v48 = vpop.eup %2777 }
 0x79d   :  { %v1563_v49 = vmul.f32 %v2778_v48, %v2776_v32  ;;  %v1820_v32 = vld [vmem:[#allocation5 + $0x148] sm:$0xff] }
 0x79e   :  { %v1824_v48 = vld [vmem:[#allocation5 + $0x168] sm:$0xff] }
 0x79f   :  { %1564 = vst [vmem:[#allocation7 + $0x6] sm:$0x1] %v1563_v49  ;;  %1632 = vmatmul.mubr.f32.vlgmr.msra.gmra.mrb[14].mxu0 %v1563_v49  ;;  %1703 = vmatmul.mubr.f32.vlgmr.msra.gmra.mrb[14].mxu1 %v1563_v49  ;;  %v1822_v49 = vld [vmem:[#allocation5 + $0x158] sm:$0xff]  ;;  %v2616_v58 = vpack.c.bf16 %v1824_v48, %v1820_v32 }
 0x7a0   :  { %1929 = vmatprep.mubr.f32.mxu0 %v2873_v0  ;;  %2000 = vmatprep.mubr.f32.mxu1 %v2873_v0  ;;  %v2600_v0 = vpack.c.bf16 %v1792_v60, %v1788_v12  ;;  %v2648_v3 = vpack.c.bf16 %v1826_v50, %v1822_v49  ;;  %v1834_v12 = vld [vmem:[#allocation5 + $0x1b8] sm:$0xff]  ;;  %v2618_v60 = vpack.c.bf16 %v1823_v62, %v1819_v61 }
 0x7a1   :  { %2599 = vmatpush1.bf16.msra.mxu0 %v2598_v8  ;;  %2631 = vmatpush1.bf16.msra.mxu1 %v2630_v11  ;;  %v1825_v8 = vld [vmem:[#allocation5 + $0x170] sm:$0xff]  ;;  %v1830_v11 = vld [vmem:[#allocation5 + $0x198] sm:$0xff] }
 0x7a2   :  { %2601 = vmatprep.subr.bf16.mxu0 %v2600_v0  ;;  %2633 = vmatprep.subr.bf16.mxu1 %v2632_v28  ;;  %v2650_v15 = vpack.c.bf16 %v1825_v8, %v1821_v4  ;;  %v2620_v0 = vpack.c.bf16 %v1832_v10, %v1828_v5  ;;  %v2652_v28 = vpack.c.bf16 %v1834_v12, %v1830_v11 }
 0x7a5   :  { %2603 = vmatpush1.bf16.msra.mxu0 %v2602_v29  ;;  %2635 = vmatpush1.bf16.msra.mxu1 %v2634_v38  ;;  %v1833_v29 = vld [vmem:[#allocation5 + $0x1b0] sm:$0xff]  ;;  %v1842_v38 = vld [vmem:[#allocation5 + $0x1f8] sm:$0xff] }
 0x7a6   :  { %2605 = vmatprep.subr.bf16.mxu0 %v2604_v45  ;;  %2637 = vmatprep.subr.bf16.mxu1 %v2636_v9  ;;  %v2654_v24 = vpack.c.bf16 %v1833_v29, %v1829_v6  ;;  %v1835_v45 = vld [vmem:[#allocation5 + $0x1c0] sm:$0xff]  ;;  %v2656_v13 = vpack.c.bf16 %v1842_v38, %v1838_v33 }
 0x7a7   :  { %v1839_v9 = vld [vmem:[#allocation5 + $0x1e0] sm:$0xff] }
 0x7a9   :  { %2607 = vmatpush1.bf16.msra.mxu0 %v2606_v22  ;;  %2639 = vmatpush1.bf16.msra.mxu1 %v2638_v35  ;;  %v2626_v22 = vpack.c.bf16 %v1839_v9, %v1835_v45 }
 0x7aa   :  { %2609 = vmatprep.subr.bf16.mxu0 %v2608_v39  ;;  %2641 = vmatprep.subr.bf16.mxu1 %v2640_v52 }
 0x7ad   :  { %2611 = vmatpush1.bf16.msra.mxu0 %v2610_v1  ;;  %2643 = vmatpush1.bf16.msra.mxu1 %v2642_v19 }
 0x7ae   :  { %2613 = vmatprep.subr.bf16.mxu0 %v2612_v20  ;;  %2645 = vmatprep.subr.bf16.mxu1 %v2644_v37 }
 0x7b1   :  { %2615 = vmatpush1.bf16.msra.mxu0 %v2614_v54  ;;  %2647 = vmatpush1.bf16.msra.mxu1 %v2646_v55 }
 0x7b2   :  { %2617 = vmatprep.subr.bf16.mxu0 %v2616_v58  ;;  %2649 = vmatprep.subr.bf16.mxu1 %v2648_v3  ;;  %v1774_v58 = vsub.s32 0, %v3087_v56 }
 0x7b5   :  { %2619 = vmatpush1.bf16.msra.mxu0 %v2618_v60  ;;  %2651 = vmatpush1.bf16.msra.mxu1 %v2650_v15 }
 0x7b6   :  { %2621 = vmatprep.subr.bf16.mxu0 %v2620_v0  ;;  %2653 = vmatprep.subr.bf16.mxu1 %v2652_v28 }
 0x7b9   :  { %2623 = vmatpush1.bf16.msra.mxu0 %v2622_v41  ;;  %2655 = vmatpush1.bf16.msra.mxu1 %v2654_v24 }
 0x7ba   :  { %2625 = vmatprep.subr.bf16.mxu0 %v2624_v43  ;;  %2657 = vmatprep.subr.bf16.mxu1 %v2656_v13 }
 0x7bd   :  { %2627 = vmatpush1.bf16.msra.mxu0 %v2626_v22  ;;  %2659 = vmatpush1.bf16.msra.mxu1 %v2658_v26 }
 0x872   :  { %v1633_v27 = vpop.f32.mrb[14].mxu0  ;;  %v1704_v31 = vpop.f32.mrb[14].mxu1 }
 0x873   :  { %v1635_v35 = vpop.f32.mrb[15].mxu0  ;;  %v1706_v39 = vpop.f32.mrb[15].mxu1 }
 0x874   :  { %v1713_v40 = vcombine.low %v1633_v27, %v1635_v35  ;;  %v1714_v44 = vcombine.low %v1704_v31, %v1706_v39 }
 0x876   :  { %v1721_v51 = vrot.slane %v1713_v40, %v3090_v59  ;;  %v1728_v52 = vrot.slane %v1714_v44, %v3090_v59 }
 0x878   :  { %v1729_v53 = vcombine.low %v1721_v51, %v1728_v52 }
 0x87a   :  { %v1736_v63 = vrot.slane %v1729_v53, %v3090_v59 }
 0x87c   :  { %v1738_v1 = vadd.f32 %v2079_v57, %v1736_v63 }
 0x87e   :  { %v2080_v2 = vmul.f32 -1.442695, %v1738_v1  ;;  %v1746_v7 = vrot.slane %v1738_v1, 1  ;;  %v1757_v19 = vrot.slane %v1738_v1, 3  ;;  %v1754_v34 = vrot.slane %v1738_v1, 2 }
 0x880   :  { %2779 = vpow2.f32 %v2080_v2  ;;  %v2081_v16 = vmul.f32 -1.442695, %v1746_v7  ;;  %v2082_v20 = vmul.f32 -1.442695, %v1757_v19 }
 0x882   :  { %2781 = vpow2.f32 %v2081_v16 }
 0x883   :  { %2783 = vpow2.f32 %v2082_v20 }
 0x88a   :  { %v2780_v25 = vpop.eup %2779 }
 0x88b   :  { %v1742_v36 = vadd.f32 1.0, %v2780_v25 }
 0x88c   :  { %v2782_v37 = vpop.eup %2781 }
 0x88d   :  { %2785 = vrcp.f32 %v1742_v36  ;;  %v1751_v42 = vadd.f32 1.0, %v2782_v37  ;;  %v2784_v46 = vpop.eup %2783 }
 0x88e   :  { %2787 = vtanh.f32 %v1754_v34  ;;  %v1762_v49 = vadd.f32 1.0, %v2784_v46 }
 0x88f   :  { %2789 = vrcp.f32 %v1751_v42 }
 0x890   :  { %2791 = vrcp.f32 %v1762_v49 }
 0x897   :  { %v2786_v32 = vpop.eup %2785 }
 0x898   :  { %v2788_v59 = vpop.eup %2787 }
 0x899   :  { %v2790_v48 = vpop.eup %2789  ;;  %v1766_v54 = vmul.f32 %v2788_v59, %v2786_v32 }
 0x89a   :  { %v1765_v50 = vmul.f32 %v2790_v48, %v3363_v47  ;;  %v2792_v61 = vpop.eup %2791 }
 0x89c   :  { %v1767_v55 = vadd.f32 %v1766_v54, %v1765_v50 }
 0x89e   :  { %2793 = vtanh.f32 %v1767_v55  ;;  %v1775_v3 = vrot.slane %v1767_v55, %v1774_v58 }
 0x8a8   :  { %v2794_v62 = vpop.eup %2793 }
 0x8a9   :  { %v1769_v4 = vmul.f32 %v2794_v62, %v2792_v61 }
 0x8ab   :  { %1770 = vst [vmem:[#allocation7 + $0x7] sm:$0x1] %v1769_v4  ;;  %v1778_v8 = vsel %vm1777_vm0, %v1769_v4, %v1775_v3 }
 0x8ac   :  { %1930 = vmatmul.mubr.f32.vlgmr.msra.gmra.mrb[16].mxu0 %v1778_v8  ;;  %2001 = vmatmul.mubr.f32.vlgmr.msra.gmra.mrb[16].mxu1 %v1778_v8 }
 0x8ad   :  { %2852 = shalt.err (!%p2849_p6)
}
 0x8ae   :  { %s2853_s10 = scalar_lea.hbm %s3413_s7, 128 }
 0x8af   :  { %p2854_p7 = scmp.ne.s32.totalorder %s3413_s7, %s2853_s10  ;;  %p2857_p8 = scmp.lt.u32.totalorder %s2853_s10, %s3413_s7 }
 0x8b1   :  { %p2859_p9 = pnand %p2857_p8, %p2854_p7 }
 0x8b3   :  { %2862 = shalt.err (!%p2859_p9)
}
 0x8b4   :  { %2037 = dma.vmem_to_hbm [thread:$0]  %s2035_s30, 128, %s3413_s7, [#allocation4]   ;;  %v1855_v47 = vsub.s32 2, %v3087_v56  ;;  %v1843_v5 = vld [vmem:[%s3411_s5] sm:$0xf]  ;;  %v1851_v10 = vsub.s32 1, %v3087_v56 }
 0x8b5   :  { %v1859_v11 = vsub.s32 3, %v3087_v56  ;;  %v1848_v12 = vrot.slane %v1843_v5, %v1774_v58  ;;  %v2021_v45 = vld [vmem:[%s3412_s6] sm:$0x3] }
 0x8b6   :  { %v1856_v60 = vrot.slane %v1843_v5, %v1855_v47  ;;  %v1852_v15 = vrot.slane %v1843_v5, %v1851_v10 }
 0x8b7   :  { %v1860_v0 = vrot.slane %v1843_v5, %v1859_v11 }
 0x97f   :  { %v1931_v21 = vpop.f32.mrb[16].mxu0  ;;  %v2002_v23 = vpop.f32.mrb[16].mxu1 }
 0x980   :  { %v1932_v6 = vadd.f32 %v1931_v21, %v1848_v12  ;;  %v2003_v28 = vadd.f32 %v2002_v23, %v1856_v60  ;;  %v1933_v29 = vpop.f32.mrb[17].mxu0  ;;  %v2004_v30 = vpop.f32.mrb[17].mxu1 }
 0x981   :  { %v1934_v14 = vadd.f32 %v1933_v29, %v1852_v15  ;;  %v2005_v33 = vadd.f32 %v2004_v30, %v1860_v0 }
 0x982   :  { %v2007_v38 = vsel %vm1777_vm0, %v1932_v6, %v2003_v28 }
 0x983   :  { %v2008_v41 = vsel %vm1777_vm0, %v1934_v14, %v2005_v33 }
 0x984   :  { %v2011_v24 = vcombine.low %v2007_v38, %v2008_v41  ;;  %v2022_v43 = vmul.f32 0.5, %v2008_v41 }
 0x986   :  { %2083 = vst.sshfl [vmem:[%s3414_s8] sm:$0x33 pattern:$0x76325410] %v2011_v24  ;;  %v2023_v56 = vmul.f32 1.442695, %v2022_v43 }
 0x988   :  { %2795 = vpow2.f32 %v2023_v56 }
 0x992   :  { %v2796_v9 = vpop.eup %2795 }
 0x993   :  { %v2025_v13 = vmul.f32 %v2796_v9, %v2021_v45 }
 0x995   :  { %v2026_v17 = vadd.f32 %v2025_v13, %v2007_v38 }
 0x997   :  { %2027 = vst [vmem:[%s3415_s9] sm:$0x3] %v2026_v17 }
 0x998   :  { %2867 = dma.done.wait [#allocation4], 128  }
 0x999   :  { %2868 = vsyncadd [#allocation4], 4294967168 }
 0x99a   :  { %2049 = vsyncpa [#allocation3], 1 }
 0x99b   :  { %2050 = vsyncpa [#allocation6], 1 }
 0x99c   :  { %2051 = vsyncpa [#allocation4], 1 }

</bundles_post_ra>
